<compile_context>
chip_gen: v6e
topology: v6e:2x2x1
jax: 0.10.0
libtpu: 0.0.40
codegen_flags: <defaults>
</compile_context>

<pallas_src>
import functools

import numpy as np
import jax
import jax.numpy as jnp
from jax.experimental import pallas as pl
from jax.experimental.pallas import tpu as pltpu


# ------------------------------ small helpers ------------------------------ #

def _cdiv(a, b):
    return (a + b - 1) // b


def _pick_tile(m):
    """Largest 'nice' M tile that divides m (keeps grid small, blocks big)."""
    for t in (512, 256, 128, 64, 32, 16, 8):
        if m % t == 0:
            return t
    return m


def _pad_last(a, target):
    pad = target - a.shape[-1]
    if pad == 0:
        return a
    return jnp.pad(a, [(0, 0)] * (a.ndim - 1) + [(0, pad)])


def _im2col(x_nhwc, ksize, stride, pad):
    """Conv patches for conv1 only. Returns ((M, k*k*C), (Ho, Wo))."""
    N, H, W, C = x_nhwc.shape
    xp = jnp.pad(x_nhwc, ((0, 0), (pad, pad), (pad, pad), (0, 0)))
    Ho = (H + 2 * pad - ksize) // stride + 1
    Wo = (W + 2 * pad - ksize) // stride + 1
    cols = []
    for dy in range(ksize):
        for dx in range(ksize):
            cols.append(xp[:, dy:dy + stride * Ho:stride, dx:dx + stride * Wo:stride, :])
    p = jnp.stack(cols, axis=3)                       # (N, Ho, Wo, k*k, C)
    return p.reshape(N * Ho * Wo, ksize * ksize * C), (Ho, Wo)


def _conv3x3_w_to_mat(w_oihw, cp):
    """(Cout, Cin, 3, 3) -> (9*Cin, cp) bf16, tap-major to match _im2col."""
    cout, cin, kh, kw = w_oihw.shape
    w = jnp.transpose(w_oihw, (2, 3, 1, 0)).reshape(kh * kw * cin, cout)
    return _pad_last(w, cp).astype(jnp.bfloat16)


def _conv3x3_w_to_taps(w_oihw, cp):
    """(Cout, Cin, 3, 3) -> (9, cp, cp) bf16: one (Cin, Cout) matrix per tap."""
    cout, cin, kh, kw = w_oihw.shape
    w = jnp.transpose(w_oihw, (2, 3, 1, 0)).reshape(kh * kw, cin, cout)
    w = jnp.pad(w, ((0, 0), (0, cp - cin), (0, cp - cout)))
    return w.astype(jnp.bfloat16)


def _conv1x1_w_to_mat(w_oi11, cp):
    w = jnp.transpose(w_oi11[:, :, 0, 0], (1, 0))     # (Cin, Cout)
    return _pad_last(w, cp).astype(jnp.bfloat16)


def _fold_bn(stats, gamma, beta, count, cp, eps=1e-5):
    """Fold training-mode BN (batch mean / biased var from in-kernel partial
    sums) into per-channel (scale, bias), each shaped (1, cp)."""
    s = jnp.sum(stats, axis=0)                        # (2, cp)
    mean = s[0] / count
    var = jnp.maximum(s[1] / count - mean * mean, 0.0)
    scale = _pad_last(gamma, cp) / jnp.sqrt(var + eps)
    bias = _pad_last(beta, cp) - mean * scale
    return scale.reshape(1, cp), bias.reshape(1, cp)


# ------------------------------ Pallas kernels ------------------------------ #

def _conv1_proj_kernel(p_ref, xs_ref, w1_ref, wsc_ref,
                       y1_ref, r_ref, st1_ref, str_ref):
    # conv1 (patches @ W1) + 1x1 shortcut conv + per-tile BN partial stats.
    y1 = jnp.dot(p_ref[...], w1_ref[...], preferred_element_type=jnp.float32)
    y1_ref[...] = y1
    st1_ref[0] = jnp.concatenate(
        [jnp.sum(y1, axis=0, keepdims=True),
         jnp.sum(y1 * y1, axis=0, keepdims=True)], axis=0)
    r = jnp.dot(xs_ref[...], wsc_ref[...], preferred_element_type=jnp.float32)
    r_ref[...] = r
    str_ref[0] = jnp.concatenate(
        [jnp.sum(r, axis=0, keepdims=True),
         jnp.sum(r * r, axis=0, keepdims=True)], axis=0)


def _conv1_id_kernel(p_ref, w1_ref, y1_ref, st1_ref):
    y1 = jnp.dot(p_ref[...], w1_ref[...], preferred_element_type=jnp.float32)
    y1_ref[...] = y1
    st1_ref[0] = jnp.concatenate(
        [jnp.sum(y1, axis=0, keepdims=True),
         jnp.sum(y1 * y1, axis=0, keepdims=True)], axis=0)


def _bn_relu_conv2_kernel(y1_ref, s_ref, b_ref, w_ref, y2_ref, st_ref, pad_ref):
    # Fused: BN1-apply + ReLU on conv1 output, then 3x3 stride-1 conv as 9
    # shifted MXU matmuls over a zero-padded image held in VMEM (no im2col in
    # HBM), plus per-image BN2 partial stats.
    hp, wp, cp = pad_ref.shape
    ho, wo = hp - 2, wp - 2
    a1 = jnp.maximum(y1_ref[0] * s_ref[...] + b_ref[...], 0.0)   # (ho, wo, cp) f32
    pad_ref[...] = jnp.zeros_like(pad_ref)
    pad_ref[1:ho + 1, 1:wo + 1, :] = a1
    acc = jnp.zeros((ho * wo, cp), jnp.float32)
    for t in range(9):                                # static 3x3 tap unroll
        dy, dx = t // 3, t % 3
        # wo is a multiple of 8 here, so this reshape is layout-trivial.
        win = pad_ref[dy:dy + ho, dx:dx + wo, :].reshape(ho * wo, cp)
        acc = acc + jnp.dot(win.astype(jnp.bfloat16), w_ref[t],
                            preferred_element_type=jnp.float32)
    y2_ref[0] = acc
    st_ref[0] = jnp.concatenate(
        [jnp.sum(acc, axis=0, keepdims=True),
         jnp.sum(acc * acc, axis=0, keepdims=True)], axis=0)


def _bn_add_relu_proj_kernel(y_ref, s_ref, b_ref, r_ref, sr_ref, br_ref, o_ref):
    main = y_ref[...] * s_ref[...] + b_ref[...]
    short = r_ref[...] * sr_ref[...] + br_ref[...]
    o_ref[...] = jnp.maximum(main + short, 0.0)


def _bn_add_relu_id_kernel(y_ref, s_ref, b_ref, r_ref, o_ref):
    o_ref[...] = jnp.maximum(y_ref[...] * s_ref[...] + b_ref[...] + r_ref[...], 0.0)


# ------------------------------ kernel launchers ---------------------------- #

def _conv1_and_shortcut(p1, xs, w1m, wscm, cp):
    M, K1 = p1.shape
    cin = xs.shape[1]
    tm = _pick_tile(M)
    nt = M // tm
    return pl.pallas_call(
        _conv1_proj_kernel,
        out_shape=(jax.ShapeDtypeStruct((M, cp), jnp.float32),
                   jax.ShapeDtypeStruct((M, cp), jnp.float32),
                   jax.ShapeDtypeStruct((nt, 2, cp), jnp.float32),
                   jax.ShapeDtypeStruct((nt, 2, cp), jnp.float32)),
        grid=(nt,),
        in_specs=[pl.BlockSpec((tm, K1), lambda i: (i, 0)),
                  pl.BlockSpec((tm, cin), lambda i: (i, 0)),
                  pl.BlockSpec((K1, cp), lambda i: (0, 0)),
                  pl.BlockSpec((cin, cp), lambda i: (0, 0))],
        out_specs=(pl.BlockSpec((tm, cp), lambda i: (i, 0)),
                   pl.BlockSpec((tm, cp), lambda i: (i, 0)),
                   pl.BlockSpec((1, 2, cp), lambda i: (i, 0, 0)),
                   pl.BlockSpec((1, 2, cp), lambda i: (i, 0, 0))),
        compiler_params=pltpu.CompilerParams(dimension_semantics=("parallel",)),
    )(p1, xs, w1m, wscm)


def _conv1_only(p1, w1m, cp):
    M, K1 = p1.shape
    tm = _pick_tile(M)
    nt = M // tm
    return pl.pallas_call(
        _conv1_id_kernel,
        out_shape=(jax.ShapeDtypeStruct((M, cp), jnp.float32),
                   jax.ShapeDtypeStruct((nt, 2, cp), jnp.float32)),
        grid=(nt,),
        in_specs=[pl.BlockSpec((tm, K1), lambda i: (i, 0)),
                  pl.BlockSpec((K1, cp), lambda i: (0, 0))],
        out_specs=(pl.BlockSpec((tm, cp), lambda i: (i, 0)),
                   pl.BlockSpec((1, 2, cp), lambda i: (i, 0, 0))),
        compiler_params=pltpu.CompilerParams(dimension_semantics=("parallel",)),
    )(p1, w1m)


def _bn_relu_conv2(y1_4d, s1, b1, w2t, cp):
    N, ho, wo, _ = y1_4d.shape
    return pl.pallas_call(
        _bn_relu_conv2_kernel,
        out_shape=(jax.ShapeDtypeStruct((N, ho * wo, cp), jnp.float32),
                   jax.ShapeDtypeStruct((N, 2, cp), jnp.float32)),
        grid=(N,),
        in_specs=[pl.BlockSpec((1, ho, wo, cp), lambda n: (n, 0, 0, 0)),
                  pl.BlockSpec((1, cp), lambda n: (0, 0)),
                  pl.BlockSpec((1, cp), lambda n: (0, 0)),
                  pl.BlockSpec((9, cp, cp), lambda n: (0, 0, 0))],
        out_specs=(pl.BlockSpec((1, ho * wo, cp), lambda n: (n, 0, 0)),
                   pl.BlockSpec((1, 2, cp), lambda n: (n, 0, 0))),
        scratch_shapes=[pltpu.VMEM((ho + 2, wo + 2, cp), jnp.float32)],
        compiler_params=pltpu.CompilerParams(dimension_semantics=("parallel",)),
    )(y1_4d, s1, b1, w2t)


def _bn_add_relu(y2, s2, b2, r, ssc=None, bsc=None):
    M, cp = y2.shape
    tm = _pick_tile(M)
    nt = M // tm
    row = pl.BlockSpec((tm, cp), lambda i: (i, 0))
    vec = pl.BlockSpec((1, cp), lambda i: (0, 0))
    if ssc is not None:
        return pl.pallas_call(
            _bn_add_relu_proj_kernel,
            out_shape=jax.ShapeDtypeStruct((M, cp), jnp.float32),
            grid=(nt,),
            in_specs=[row, vec, vec, row, vec, vec],
            out_specs=row,
            compiler_params=pltpu.CompilerParams(dimension_semantics=("parallel",)),
        )(y2, s2, b2, r, ssc, bsc)
    return pl.pallas_call(
        _bn_add_relu_id_kernel,
        out_shape=jax.ShapeDtypeStruct((M, cp), jnp.float32),
        grid=(nt,),
        in_specs=[row, vec, vec, row],
        out_specs=row,
        compiler_params=pltpu.CompilerParams(dimension_semantics=("parallel",)),
    )(y2, s2, b2, r)


# ------------------------------ forward wrapper ----------------------------- #

@functools.partial(jax.jit, static_argnums=(2,))
def basic_block_forward(x_nchw, params, stride):
    N, cin, H, W = x_nchw.shape
    cout = params["w1"].shape[0]
    cp = 128 * _cdiv(cout, 128)                 # lane-dense channel padding
    has_proj = (stride != 1) or (cin != cout)

    x = jnp.transpose(x_nchw, (0, 2, 3, 1)).astype(jnp.float32)   # NHWC

    # conv1 patches, bf16 (small: 9*Cin columns).
    # TODO(synk): build conv1 patches inside the kernel (shifted slices of the
    # raw input) to avoid this HBM materialization at real ResNet channel
    # counts; conv2 already avoids im2col entirely.
    p1, (Ho, Wo) = _im2col(x, 3, stride, 1)
    p1 = p1.astype(jnp.bfloat16)
    M = N * Ho * Wo

    w1m = _conv3x3_w_to_mat(params["w1"], cp)

    if has_proj:
        xs = x[:, ::stride, ::stride, :][:, :Ho, :Wo, :].reshape(M, cin)
        wscm = _conv1x1_w_to_mat(params["wsc"], cp)
        y1, r, st1, str_ = _conv1_and_shortcut(p1, xs.astype(jnp.bfloat16),
                                               w1m, wscm, cp)
        ssc, bsc = _fold_bn(str_, params["gsc"], params["btsc"], M, cp)
    else:
        y1, st1 = _conv1_only(p1, w1m, cp)
        r = _pad_last(x.reshape(M, cin), cp)    # identity shortcut, exact f32 add
        ssc = bsc = None
    s1, b1 = _fold_bn(st1, params["g1"], params["bt1"], M, cp)

    # fused BN1+ReLU+conv2 (+BN2 partial stats), one grid step per image
    w2t = _conv3x3_w_to_taps(params["w2"], cp)
    y2, st2 = _bn_relu_conv2(y1.reshape(N, Ho, Wo, cp), s1, b1, w2t, cp)
    s2, b2 = _fold_bn(st2, params["g2"], params["bt2"], M, cp)

    out = _bn_add_relu(y2.reshape(M, cp), s2, b2, r, ssc, bsc)
    out = out[:, :cout].reshape(N, Ho, Wo, cout)
    return jnp.transpose(out, (0, 3, 1, 2))     # -> NCHW


# ----------------------------- pure-JAX reference ---------------------------- #

def basic_block_reference(x, params, stride):
    def conv(x, w, s, p):
        return jax.lax.conv_general_dilated(
            x, w, (s, s), [(p, p), (p, p)],
            dimension_numbers=("NCHW", "OIHW", "NCHW"))

    def bn(y, g, b, eps=1e-5):
        mean = jnp.mean(y, axis=(0, 2, 3), keepdims=True)
        var = jnp.mean((y - mean) ** 2, axis=(0, 2, 3), keepdims=True)
        return ((y - mean) / jnp.sqrt(var + eps) * g.reshape(1, -1, 1, 1)
                + b.reshape(1, -1, 1, 1))

    out = jax.nn.relu(bn(conv(x, params["w1"], stride, 1), params["g1"], params["bt1"]))
    out = bn(conv(out, params["w2"], 1, 1), params["g2"], params["bt2"])
    cin, cout = params["w1"].shape[1], params["w1"].shape[0]
    if stride != 1 or cin != cout:
        sc = bn(conv(x, params["wsc"], stride, 0), params["gsc"], params["btsc"])
    else:
        sc = x
    return jax.nn.relu(out + sc)


# ----------------------------------- main ------------------------------------ #

if __name__ == "__main__":
    def make_params(key, cin, cout):
        ks = jax.random.split(key, 9)
        return {
            "w1":  0.1 * jax.random.normal(ks[0], (cout, cin, 3, 3), jnp.float32),
            "g1":  1.0 + 0.1 * jax.random.normal(ks[1], (cout,), jnp.float32),
            "bt1": 0.1 * jax.random.normal(ks[2], (cout,), jnp.float32),
            "w2":  0.1 * jax.random.normal(ks[3], (cout, cout, 3, 3), jnp.float32),
            "g2":  1.0 + 0.1 * jax.random.normal(ks[4], (cout,), jnp.float32),
            "bt2": 0.1 * jax.random.normal(ks[5], (cout,), jnp.float32),
            "wsc": 0.1 * jax.random.normal(ks[6], (cout, cin, 1, 1), jnp.float32),
            "gsc": 1.0 + 0.1 * jax.random.normal(ks[7], (cout,), jnp.float32),
            "btsc": 0.1 * jax.random.normal(ks[8], (cout,), jnp.float32),
        }

    key = jax.random.PRNGKey(0)
    cases = [
        # (N, Cin, H, W, Cout, stride)
        (2, 4, 16, 16, 8, 2),    # projection shortcut (stride 2, Cin != Cout)
        (2, 8, 16, 16, 8, 1),    # identity shortcut
    ]
    for idx, (N, cin, H, W, cout, stride) in enumerate(cases):
        kp, kx = jax.random.split(jax.random.fold_in(key, idx))
        params = make_params(kp, cin, cout)
        x = jax.random.normal(kx, (N, cin, H, W), jnp.float32)

        out = jax.block_until_ready(basic_block_forward(x, params, stride))
        ref = jax.block_until_ready(basic_block_reference(x, params, stride))

        Ho = (H + 2 - 3) // stride + 1
        assert out.shape == ref.shape == (N, cout, Ho, Ho)
        # bf16 MXU operands (f32 accumulation) -> slightly looser tolerance
        # than a pure-f32 pipeline.
        np.testing.assert_allclose(np.asarray(out), np.asarray(ref),
                                   atol=2e-2, rtol=2e-2)

    print("KERNEL_OK")
</pallas_src>

<mosaic_0001>
module attributes {stable_mosaic.version = 11 : i64} {
  func.func @_conv1_proj_kernel(%arg0: i32, %arg1: memref<128x36xbf16, #tpu.memory_space<vmem>>, %arg2: memref<128x4xbf16, #tpu.memory_space<vmem>>, %arg3: memref<36x128xbf16, #tpu.memory_space<vmem>>, %arg4: memref<4x128xbf16, #tpu.memory_space<vmem>>, %arg5: memref<128x128xf32, #tpu.memory_space<vmem>>, %arg6: memref<128x128xf32, #tpu.memory_space<vmem>>, %arg7: memref<1x2x128xf32, #tpu.memory_space<vmem>>, %arg8: memref<1x2x128xf32, #tpu.memory_space<vmem>>) attributes {dimension_semantics = [#tpu.dimension_semantics<parallel>], iteration_bounds = array<i64: 1>, scalar_prefetch = 0 : i64, scratch_operands = 0 : i64, tpu.core_type = #tpu.core_type<tc>, window_params = [{transform_indices = @transform_0, window_bounds = array<i64: 128, 36>}, {transform_indices = @transform_1, window_bounds = array<i64: 128, 4>}, {pipeline_mode = #tpu.pipeline_mode<synchronous>, transform_indices = @transform_2, window_bounds = array<i64: 36, 128>}, {pipeline_mode = #tpu.pipeline_mode<synchronous>, transform_indices = @transform_3, window_bounds = array<i64: 4, 128>}, {transform_indices = @transform_4, window_bounds = array<i64: 128, 128>}, {transform_indices = @transform_5, window_bounds = array<i64: 128, 128>}, {transform_indices = @transform_6, window_bounds = array<i64: 1, 2, 128>}, {transform_indices = @transform_7, window_bounds = array<i64: 1, 2, 128>}]} {
    %c0 = arith.constant 0 : index
    %c0_0 = arith.constant 0 : index
    %0 = vector.load %arg1[%c0, %c0_0] : memref<128x36xbf16, #tpu.memory_space<vmem>>, vector<128x36xbf16>
    %c0_1 = arith.constant 0 : index
    %c0_2 = arith.constant 0 : index
    %1 = vector.load %arg3[%c0_1, %c0_2] : memref<36x128xbf16, #tpu.memory_space<vmem>>, vector<36x128xbf16>
    %cst = arith.constant dense<0.000000e+00> : vector<128x128xf32>
    %2 = tpu.matmul %0, %1, %cst {dimension_numbers = #tpu.dot_dimension_numbers<[1], [0], [0], [1], [0, 0, 1, 1], [], []>} : vector<128x36xbf16>, vector<36x128xbf16>, vector<128x128xf32> -> vector<128x128xf32>
    %c0_3 = arith.constant 0 : index
    %c0_4 = arith.constant 0 : index
    %3 = vector.load %arg5[%c0_3, %c0_4] : memref<128x128xf32, #tpu.memory_space<vmem>>, vector<128x128xf32>
    tpu.vector_store %arg5[%c0_3, %c0_4], %2 {strides = array<i32>} : memref<128x128xf32, #tpu.memory_space<vmem>>, vector<128x128xf32>,
    %cst_5 = arith.constant dense<0.000000e+00> : vector<128xf32>
    %4 = vector.multi_reduction <add>, %2, %cst_5 [0] : vector<128x128xf32> to vector<128xf32>
    %5 = vector.shape_cast %4 : vector<128xf32> to vector<1x128xf32>
    %6 = arith.mulf %2, %2 : vector<128x128xf32>
    %cst_6 = arith.constant dense<0.000000e+00> : vector<128xf32>
    %7 = vector.multi_reduction <add>, %6, %cst_6 [0] : vector<128x128xf32> to vector<128xf32>
    %8 = vector.shape_cast %7 : vector<128xf32> to vector<1x128xf32>
    %9 = tpu.concatenate %5, %8 in 0 : vector<1x128xf32>, vector<1x128xf32> -> vector<2x128xf32>
    %c0_7 = arith.constant 0 : index
    %c0_8 = arith.constant 0 : index
    %c0_9 = arith.constant 0 : index
    %10 = vector.load %arg7[%c0_7, %c0_8, %c0_9] : memref<1x2x128xf32, #tpu.memory_space<vmem>>, vector<1x2x128xf32>
    %11 = vector.shape_cast %10 : vector<1x2x128xf32> to vector<2x128xf32>
    %12 = vector.shape_cast %9 : vector<2x128xf32> to vector<1x2x128xf32>
    tpu.vector_store %arg7[%c0_7, %c0_8, %c0_9], %12 {strides = array<i32>} : memref<1x2x128xf32, #tpu.memory_space<vmem>>, vector<1x2x128xf32>,
    %c0_10 = arith.constant 0 : index
    %c0_11 = arith.constant 0 : index
    %13 = vector.load %arg2[%c0_10, %c0_11] : memref<128x4xbf16, #tpu.memory_space<vmem>>, vector<128x4xbf16>
    %c0_12 = arith.constant 0 : index
    %c0_13 = arith.constant 0 : index
    %14 = vector.load %arg4[%c0_12, %c0_13] : memref<4x128xbf16, #tpu.memory_space<vmem>>, vector<4x128xbf16>
    %cst_14 = arith.constant dense<0.000000e+00> : vector<128x128xf32>
    %15 = tpu.matmul %13, %14, %cst_14 {dimension_numbers = #tpu.dot_dimension_numbers<[1], [0], [0], [1], [0, 0, 1, 1], [], []>} : vector<128x4xbf16>, vector<4x128xbf16>, vector<128x128xf32> -> vector<128x128xf32>
    %c0_15 = arith.constant 0 : index
    %c0_16 = arith.constant 0 : index
    %16 = vector.load %arg6[%c0_15, %c0_16] : memref<128x128xf32, #tpu.memory_space<vmem>>, vector<128x128xf32>
    tpu.vector_store %arg6[%c0_15, %c0_16], %15 {strides = array<i32>} : memref<128x128xf32, #tpu.memory_space<vmem>>, vector<128x128xf32>,
    %cst_17 = arith.constant dense<0.000000e+00> : vector<128xf32>
    %17 = vector.multi_reduction <add>, %15, %cst_17 [0] : vector<128x128xf32> to vector<128xf32>
    %18 = vector.shape_cast %17 : vector<128xf32> to vector<1x128xf32>
    %19 = arith.mulf %15, %15 : vector<128x128xf32>
    %cst_18 = arith.constant dense<0.000000e+00> : vector<128xf32>
    %20 = vector.multi_reduction <add>, %19, %cst_18 [0] : vector<128x128xf32> to vector<128xf32>
    %21 = vector.shape_cast %20 : vector<128xf32> to vector<1x128xf32>
    %22 = tpu.concatenate %18, %21 in 0 : vector<1x128xf32>, vector<1x128xf32> -> vector<2x128xf32>
    %c0_19 = arith.constant 0 : index
    %c0_20 = arith.constant 0 : index
    %c0_21 = arith.constant 0 : index
    %23 = vector.load %arg8[%c0_19, %c0_20, %c0_21] : memref<1x2x128xf32, #tpu.memory_space<vmem>>, vector<1x2x128xf32>
    %24 = vector.shape_cast %23 : vector<1x2x128xf32> to vector<2x128xf32>
    %25 = vector.shape_cast %22 : vector<2x128xf32> to vector<1x2x128xf32>
    tpu.vector_store %arg8[%c0_19, %c0_20, %c0_21], %25 {strides = array<i32>} : memref<1x2x128xf32, #tpu.memory_space<vmem>>, vector<1x2x128xf32>,
    return
  }
  func.func @transform_0(%arg0: i32) -> (i32, i32) {
    %c0_i32 = arith.constant 0 : i32
    %c0_i32_0 = arith.constant 0 : i32
    return %arg0, %c0_i32 : i32, i32
  }
  func.func @transform_1(%arg0: i32) -> (i32, i32) {
    %c0_i32 = arith.constant 0 : i32
    %c0_i32_0 = arith.constant 0 : i32
    return %arg0, %c0_i32 : i32, i32
  }
  func.func @transform_2(%arg0: i32) -> (i32, i32) {
    %c0_i32 = arith.constant 0 : i32
    %c0_i32_0 = arith.constant 0 : i32
    %c0_i32_1 = arith.constant 0 : i32
    return %c0_i32, %c0_i32_0 : i32, i32
  }
  func.func @transform_3(%arg0: i32) -> (i32, i32) {
    %c0_i32 = arith.constant 0 : i32
    %c0_i32_0 = arith.constant 0 : i32
    %c0_i32_1 = arith.constant 0 : i32
    return %c0_i32, %c0_i32_0 : i32, i32
  }
  func.func @transform_4(%arg0: i32) -> (i32, i32) {
    %c0_i32 = arith.constant 0 : i32
    %c0_i32_0 = arith.constant 0 : i32
    return %arg0, %c0_i32 : i32, i32
  }
  func.func @transform_5(%arg0: i32) -> (i32, i32) {
    %c0_i32 = arith.constant 0 : i32
    %c0_i32_0 = arith.constant 0 : i32
    return %arg0, %c0_i32 : i32, i32
  }
  func.func @transform_6(%arg0: i32) -> (i32, i32, i32) {
    %c0_i32 = arith.constant 0 : i32
    %c0_i32_0 = arith.constant 0 : i32
    %c0_i32_1 = arith.constant 0 : i32
    return %arg0, %c0_i32, %c0_i32_0 : i32, i32, i32
  }
  func.func @transform_7(%arg0: i32) -> (i32, i32, i32) {
    %c0_i32 = arith.constant 0 : i32
    %c0_i32_0 = arith.constant 0 : i32
    %c0_i32_1 = arith.constant 0 : i32
    return %arg0, %c0_i32, %c0_i32_0 : i32, i32, i32
  }
}

module attributes {stable_mosaic.version = 11 : i64} {
  func.func @_bn_relu_conv2_kernel(%arg0: i32, %arg1: memref<1x8x8x128xf32, #tpu.memory_space<vmem>>, %arg2: memref<1x128xf32, #tpu.memory_space<vmem>>, %arg3: memref<1x128xf32, #tpu.memory_space<vmem>>, %arg4: memref<9x128x128xbf16, #tpu.memory_space<vmem>>, %arg5: memref<1x64x128xf32, #tpu.memory_space<vmem>>, %arg6: memref<1x2x128xf32, #tpu.memory_space<vmem>>, %arg7: memref<10x10x128xf32, #tpu.memory_space<vmem>>) attributes {dimension_semantics = [#tpu.dimension_semantics<parallel>], iteration_bounds = array<i64: 2>, scalar_prefetch = 0 : i64, scratch_operands = 1 : i64, tpu.core_type = #tpu.core_type<tc>, window_params = [{transform_indices = @transform_0, window_bounds = array<i64: 1, 8, 8, 128>}, {pipeline_mode = #tpu.pipeline_mode<synchronous>, transform_indices = @transform_1, window_bounds = array<i64: 1, 128>}, {pipeline_mode = #tpu.pipeline_mode<synchronous>, transform_indices = @transform_2, window_bounds = array<i64: 1, 128>}, {pipeline_mode = #tpu.pipeline_mode<synchronous>, transform_indices = @transform_3, window_bounds = array<i64: 9, 128, 128>}, {transform_indices = @transform_4, window_bounds = array<i64: 1, 64, 128>}, {transform_indices = @transform_5, window_bounds = array<i64: 1, 2, 128>}]} {
    %c0 = arith.constant 0 : index
    %c0_0 = arith.constant 0 : index
    %c0_1 = arith.constant 0 : index
    %c0_2 = arith.constant 0 : index
    %0 = vector.load %arg1[%c0, %c0_0, %c0_1, %c0_2] : memref<1x8x8x128xf32, #tpu.memory_space<vmem>>, vector<1x8x8x128xf32>
    %1 = vector.shape_cast %0 : vector<1x8x8x128xf32> to vector<8x8x128xf32>
    %c0_3 = arith.constant 0 : index
    %c0_4 = arith.constant 0 : index
    %2 = vector.load %arg2[%c0_3, %c0_4] : memref<1x128xf32, #tpu.memory_space<vmem>>, vector<1x128xf32>
    %3 = vector.shape_cast %2 : vector<1x128xf32> to vector<1x1x128xf32>
    %4 = vector.broadcast %3 : vector<1x1x128xf32> to vector<8x8x128xf32>
    %5 = arith.mulf %1, %4 : vector<8x8x128xf32>
    %c0_5 = arith.constant 0 : index
    %c0_6 = arith.constant 0 : index
    %6 = vector.load %arg3[%c0_5, %c0_6] : memref<1x128xf32, #tpu.memory_space<vmem>>, vector<1x128xf32>
    %7 = vector.shape_cast %6 : vector<1x128xf32> to vector<1x1x128xf32>
    %8 = vector.broadcast %7 : vector<1x1x128xf32> to vector<8x8x128xf32>
    %9 = arith.addf %5, %8 : vector<8x8x128xf32>
    %cst = arith.constant 0.000000e+00 : f32
    %10 = vector.broadcast %cst : f32 to vector<8x8x128xf32>
    %11 = arith.maximumf %9, %10 : vector<8x8x128xf32>
    %cst_7 = arith.constant 0.000000e+00 : f32
    %12 = vector.broadcast %cst_7 : f32 to vector<10x10x128xf32>
    %c0_8 = arith.constant 0 : index
    %c0_9 = arith.constant 0 : index
    %c0_10 = arith.constant 0 : index
    %13 = vector.load %arg7[%c0_8, %c0_9, %c0_10] : memref<10x10x128xf32, #tpu.memory_space<vmem>>, vector<10x10x128xf32>
    tpu.vector_store %arg7[%c0_8, %c0_9, %c0_10], %12 {strides = array<i32>} : memref<10x10x128xf32, #tpu.memory_space<vmem>>, vector<10x10x128xf32>,
    %c1 = arith.constant 1 : index
    %c1_11 = arith.constant 1 : index
    %c0_12 = arith.constant 0 : index
    %14 = vector.load %arg7[%c1, %c1_11, %c0_12] : memref<10x10x128xf32, #tpu.memory_space<vmem>>, vector<8x8x128xf32>
    tpu.vector_store %arg7[%c1, %c1_11, %c0_12], %11 {strides = array<i32>} : memref<10x10x128xf32, #tpu.memory_space<vmem>>, vector<8x8x128xf32>,
    %cst_13 = arith.constant 0.000000e+00 : f32
    %15 = vector.broadcast %cst_13 : f32 to vector<64x128xf32>
    %c0_14 = arith.constant 0 : index
    %c0_15 = arith.constant 0 : index
    %c0_16 = arith.constant 0 : index
    %16 = vector.load %arg7[%c0_14, %c0_15, %c0_16] : memref<10x10x128xf32, #tpu.memory_space<vmem>>, vector<8x8x128xf32>
    %17 = vector.shape_cast %16 : vector<8x8x128xf32> to vector<64x128xf32>
    %18 = arith.truncf %17 : vector<64x128xf32> to vector<64x128xbf16>
    %c0_17 = arith.constant 0 : index
    %c0_18 = arith.constant 0 : index
    %c0_19 = arith.constant 0 : index
    %19 = vector.load %arg4[%c0_17, %c0_18, %c0_19] : memref<9x128x128xbf16, #tpu.memory_space<vmem>>, vector<1x128x128xbf16>
    %20 = vector.shape_cast %19 : vector<1x128x128xbf16> to vector<128x128xbf16>
    %cst_20 = arith.constant dense<0.000000e+00> : vector<64x128xf32>
    %21 = tpu.matmul %18, %20, %cst_20 {dimension_numbers = #tpu.dot_dimension_numbers<[1], [0], [0], [1], [0, 0, 1, 1], [], []>} : vector<64x128xbf16>, vector<128x128xbf16>, vector<64x128xf32> -> vector<64x128xf32>
    %22 = arith.addf %15, %21 : vector<64x128xf32>
    %c0_21 = arith.constant 0 : index
    %c1_22 = arith.constant 1 : index
    %c0_23 = arith.constant 0 : index
    %23 = vector.load %arg7[%c0_21, %c1_22, %c0_23] : memref<10x10x128xf32, #tpu.memory_space<vmem>>, vector<8x8x128xf32>
    %24 = vector.shape_cast %23 : vector<8x8x128xf32> to vector<64x128xf32>
    %25 = arith.truncf %24 : vector<64x128xf32> to vector<64x128xbf16>
    %c1_24 = arith.constant 1 : index
    %c0_25 = arith.constant 0 : index
    %c0_26 = arith.constant 0 : index
    %26 = vector.load %arg4[%c1_24, %c0_25, %c0_26] : memref<9x128x128xbf16, #tpu.memory_space<vmem>>, vector<1x128x128xbf16>
    %27 = vector.shape_cast %26 : vector<1x128x128xbf16> to vector<128x128xbf16>
    %cst_27 = arith.constant dense<0.000000e+00> : vector<64x128xf32>
    %28 = tpu.matmul %25, %27, %cst_27 {dimension_numbers = #tpu.dot_dimension_numbers<[1], [0], [0], [1], [0, 0, 1, 1], [], []>} : vector<64x128xbf16>, vector<128x128xbf16>, vector<64x128xf32> -> vector<64x128xf32>
    %29 = arith.addf %22, %28 : vector<64x128xf32>
    %c0_28 = arith.constant 0 : index
    %c2 = arith.constant 2 : index
    %c0_29 = arith.constant 0 : index
    %30 = vector.load %arg7[%c0_28, %c2, %c0_29] : memref<10x10x128xf32, #tpu.memory_space<vmem>>, vector<8x8x128xf32>
    %31 = vector.shape_cast %30 : vector<8x8x128xf32> to vector<64x128xf32>
    %32 = arith.truncf %31 : vector<64x128xf32> to vector<64x128xbf16>
    %c2_30 = arith.constant 2 : index
    %c0_31 = arith.constant 0 : index
    %c0_32 = arith.constant 0 : index
    %33 = vector.load %arg4[%c2_30, %c0_31, %c0_32] : memref<9x128x128xbf16, #tpu.memory_space<vmem>>, vector<1x128x128xbf16>
    %34 = vector.shape_cast %33 : vector<1x128x128xbf16> to vector<128x128xbf16>
    %cst_33 = arith.constant dense<0.000000e+00> : vector<64x128xf32>
    %35 = tpu.matmul %32, %34, %cst_33 {dimension_numbers = #tpu.dot_dimension_numbers<[1], [0], [0], [1], [0, 0, 1, 1], [], []>} : vector<64x128xbf16>, vector<128x128xbf16>, vector<64x128xf32> -> vector<64x128xf32>
    %36 = arith.addf %29, %35 : vector<64x128xf32>
    %c1_34 = arith.constant 1 : index
    %c0_35 = arith.constant 0 : index
    %c0_36 = arith.constant 0 : index
    %37 = vector.load %arg7[%c1_34, %c0_35, %c0_36] : memref<10x10x128xf32, #tpu.memory_space<vmem>>, vector<8x8x128xf32>
    %38 = vector.shape_cast %37 : vector<8x8x128xf32> to vector<64x128xf32>
    %39 = arith.truncf %38 : vector<64x128xf32> to vector<64x128xbf16>
    %c3 = arith.constant 3 : index
    %c0_37 = arith.constant 0 : index
    %c0_38 = arith.constant 0 : index
    %40 = vector.load %arg4[%c3, %c0_37, %c0_38] : memref<9x128x128xbf16, #tpu.memory_space<vmem>>, vector<1x128x128xbf16>
    %41 = vector.shape_cast %40 : vector<1x128x128xbf16> to vector<128x128xbf16>
    %cst_39 = arith.constant dense<0.000000e+00> : vector<64x128xf32>
    %42 = tpu.matmul %39, %41, %cst_39 {dimension_numbers = #tpu.dot_dimension_numbers<[1], [0], [0], [1], [0, 0, 1, 1], [], []>} : vector<64x128xbf16>, vector<128x128xbf16>, vector<64x128xf32> -> vector<64x128xf32>
    %43 = arith.addf %36, %42 : vector<64x128xf32>
    %c1_40 = arith.constant 1 : index
    %c1_41 = arith.constant 1 : index
    %c0_42 = arith.constant 0 : index
    %44 = vector.load %arg7[%c1_40, %c1_41, %c0_42] : memref<10x10x128xf32, #tpu.memory_space<vmem>>, vector<8x8x128xf32>
    %45 = vector.shape_cast %44 : vector<8x8x128xf32> to vector<64x128xf32>
    %46 = arith.truncf %45 : vector<64x128xf32> to vector<64x128xbf16>
    %c4 = arith.constant 4 : index
    %c0_43 = arith.constant 0 : index
    %c0_44 = arith.constant 0 : index
    %47 = vector.load %arg4[%c4, %c0_43, %c0_44] : memref<9x128x128xbf16, #tpu.memory_space<vmem>>, vector<1x128x128xbf16>
    %48 = vector.shape_cast %47 : vector<1x128x128xbf16> to vector<128x128xbf16>
    %cst_45 = arith.constant dense<0.000000e+00> : vector<64x128xf32>
    %49 = tpu.matmul %46, %48, %cst_45 {dimension_numbers = #tpu.dot_dimension_numbers<[1], [0], [0], [1], [0, 0, 1, 1], [], []>} : vector<64x128xbf16>, vector<128x128xbf16>, vector<64x128xf32> -> vector<64x128xf32>
    %50 = arith.addf %43, %49 : vector<64x128xf32>
    %c1_46 = arith.constant 1 : index
    %c2_47 = arith.constant 2 : index
    %c0_48 = arith.constant 0 : index
    %51 = vector.load %arg7[%c1_46, %c2_47, %c0_48] : memref<10x10x128xf32, #tpu.memory_space<vmem>>, vector<8x8x128xf32>
    %52 = vector.shape_cast %51 : vector<8x8x128xf32> to vector<64x128xf32>
    %53 = arith.truncf %52 : vector<64x128xf32> to vector<64x128xbf16>
    %c5 = arith.constant 5 : index
    %c0_49 = arith.constant 0 : index
    %c0_50 = arith.constant 0 : index
    %54 = vector.load %arg4[%c5, %c0_49, %c0_50] : memref<9x128x128xbf16, #tpu.memory_space<vmem>>, vector<1x128x128xbf16>
    %55 = vector.shape_cast %54 : vector<1x128x128xbf16> to vector<128x128xbf16>
    %cst_51 = arith.constant dense<0.000000e+00> : vector<64x128xf32>
    %56 = tpu.matmul %53, %55, %cst_51 {dimension_numbers = #tpu.dot_dimension_numbers<[1], [0], [0], [1], [0, 0, 1, 1], [], []>} : vector<64x128xbf16>, vector<128x128xbf16>, vector<64x128xf32> -> vector<64x128xf32>
    %57 = arith.addf %50, %56 : vector<64x128xf32>
    %c2_52 = arith.constant 2 : index
    %c0_53 = arith.constant 0 : index
    %c0_54 = arith.constant 0 : index
    %58 = vector.load %arg7[%c2_52, %c0_53, %c0_54] : memref<10x10x128xf32, #tpu.memory_space<vmem>>, vector<8x8x128xf32>
    %59 = vector.shape_cast %58 : vector<8x8x128xf32> to vector<64x128xf32>
    %60 = arith.truncf %59 : vector<64x128xf32> to vector<64x128xbf16>
    %c6 = arith.constant 6 : index
    %c0_55 = arith.constant 0 : index
    %c0_56 = arith.constant 0 : index
    %61 = vector.load %arg4[%c6, %c0_55, %c0_56] : memref<9x128x128xbf16, #tpu.memory_space<vmem>>, vector<1x128x128xbf16>
    %62 = vector.shape_cast %61 : vector<1x128x128xbf16> to vector<128x128xbf16>
    %cst_57 = arith.constant dense<0.000000e+00> : vector<64x128xf32>
    %63 = tpu.matmul %60, %62, %cst_57 {dimension_numbers = #tpu.dot_dimension_numbers<[1], [0], [0], [1], [0, 0, 1, 1], [], []>} : vector<64x128xbf16>, vector<128x128xbf16>, vector<64x128xf32> -> vector<64x128xf32>
    %64 = arith.addf %57, %63 : vector<64x128xf32>
    %c2_58 = arith.constant 2 : index
    %c1_59 = arith.constant 1 : index
    %c0_60 = arith.constant 0 : index
    %65 = vector.load %arg7[%c2_58, %c1_59, %c0_60] : memref<10x10x128xf32, #tpu.memory_space<vmem>>, vector<8x8x128xf32>
    %66 = vector.shape_cast %65 : vector<8x8x128xf32> to vector<64x128xf32>
    %67 = arith.truncf %66 : vector<64x128xf32> to vector<64x128xbf16>
    %c7 = arith.constant 7 : index
    %c0_61 = arith.constant 0 : index
    %c0_62 = arith.constant 0 : index
    %68 = vector.load %arg4[%c7, %c0_61, %c0_62] : memref<9x128x128xbf16, #tpu.memory_space<vmem>>, vector<1x128x128xbf16>
    %69 = vector.shape_cast %68 : vector<1x128x128xbf16> to vector<128x128xbf16>
    %cst_63 = arith.constant dense<0.000000e+00> : vector<64x128xf32>
    %70 = tpu.matmul %67, %69, %cst_63 {dimension_numbers = #tpu.dot_dimension_numbers<[1], [0], [0], [1], [0, 0, 1, 1], [], []>} : vector<64x128xbf16>, vector<128x128xbf16>, vector<64x128xf32> -> vector<64x128xf32>
    %71 = arith.addf %64, %70 : vector<64x128xf32>
    %c2_64 = arith.constant 2 : index
    %c2_65 = arith.constant 2 : index
    %c0_66 = arith.constant 0 : index
    %72 = vector.load %arg7[%c2_64, %c2_65, %c0_66] : memref<10x10x128xf32, #tpu.memory_space<vmem>>, vector<8x8x128xf32>
    %73 = vector.shape_cast %72 : vector<8x8x128xf32> to vector<64x128xf32>
    %74 = arith.truncf %73 : vector<64x128xf32> to vector<64x128xbf16>
    %c8 = arith.constant 8 : index
    %c0_67 = arith.constant 0 : index
    %c0_68 = arith.constant 0 : index
    %75 = vector.load %arg4[%c8, %c0_67, %c0_68] : memref<9x128x128xbf16, #tpu.memory_space<vmem>>, vector<1x128x128xbf16>
    %76 = vector.shape_cast %75 : vector<1x128x128xbf16> to vector<128x128xbf16>
    %cst_69 = arith.constant dense<0.000000e+00> : vector<64x128xf32>
    %77 = tpu.matmul %74, %76, %cst_69 {dimension_numbers = #tpu.dot_dimension_numbers<[1], [0], [0], [1], [0, 0, 1, 1], [], []>} : vector<64x128xbf16>, vector<128x128xbf16>, vector<64x128xf32> -> vector<64x128xf32>
    %78 = arith.addf %71, %77 : vector<64x128xf32>
    %c0_70 = arith.constant 0 : index
    %c0_71 = arith.constant 0 : index
    %c0_72 = arith.constant 0 : index
    %79 = vector.load %arg5[%c0_70, %c0_71, %c0_72] : memref<1x64x128xf32, #tpu.memory_space<vmem>>, vector<1x64x128xf32>
    %80 = vector.shape_cast %79 : vector<1x64x128xf32> to vector<64x128xf32>
    %81 = vector.shape_cast %78 : vector<64x128xf32> to vector<1x64x128xf32>
    tpu.vector_store %arg5[%c0_70, %c0_71, %c0_72], %81 {strides = array<i32>} : memref<1x64x128xf32, #tpu.memory_space<vmem>>, vector<1x64x128xf32>,
    %cst_73 = arith.constant dense<0.000000e+00> : vector<128xf32>
    %82 = vector.multi_reduction <add>, %78, %cst_73 [0] : vector<64x128xf32> to vector<128xf32>
    %83 = vector.shape_cast %82 : vector<128xf32> to vector<1x128xf32>
    %84 = arith.mulf %78, %78 : vector<64x128xf32>
    %cst_74 = arith.constant dense<0.000000e+00> : vector<128xf32>
    %85 = vector.multi_reduction <add>, %84, %cst_74 [0] : vector<64x128xf32> to vector<128xf32>
    %86 = vector.shape_cast %85 : vector<128xf32> to vector<1x128xf32>
    %87 = tpu.concatenate %83, %86 in 0 : vector<1x128xf32>, vector<1x128xf32> -> vector<2x128xf32>
    %c0_75 = arith.constant 0 : index
    %c0_76 = arith.constant 0 : index
    %c0_77 = arith.constant 0 : index
    %88 = vector.load %arg6[%c0_75, %c0_76, %c0_77] : memref<1x2x128xf32, #tpu.memory_space<vmem>>, vector<1x2x128xf32>
    %89 = vector.shape_cast %88 : vector<1x2x128xf32> to vector<2x128xf32>
    %90 = vector.shape_cast %87 : vector<2x128xf32> to vector<1x2x128xf32>
    tpu.vector_store %arg6[%c0_75, %c0_76, %c0_77], %90 {strides = array<i32>} : memref<1x2x128xf32, #tpu.memory_space<vmem>>, vector<1x2x128xf32>,
    return
  }
  func.func @transform_0(%arg0: i32) -> (i32, i32, i32, i32) {
    %c0_i32 = arith.constant 0 : i32
    %c0_i32_0 = arith.constant 0 : i32
    %c0_i32_1 = arith.constant 0 : i32
    %c0_i32_2 = arith.constant 0 : i32
    return %arg0, %c0_i32, %c0_i32_0, %c0_i32_1 : i32, i32, i32, i32
  }
  func.func @transform_1(%arg0: i32) -> (i32, i32) {
    %c0_i32 = arith.constant 0 : i32
    %c0_i32_0 = arith.constant 0 : i32
    %c0_i32_1 = arith.constant 0 : i32
    return %c0_i32, %c0_i32_0 : i32, i32
  }
  func.func @transform_2(%arg0: i32) -> (i32, i32) {
    %c0_i32 = arith.constant 0 : i32
    %c0_i32_0 = arith.constant 0 : i32
    %c0_i32_1 = arith.constant 0 : i32
    return %c0_i32, %c0_i32_0 : i32, i32
  }
  func.func @transform_3(%arg0: i32) -> (i32, i32, i32) {
    %c0_i32 = arith.constant 0 : i32
    %c0_i32_0 = arith.constant 0 : i32
    %c0_i32_1 = arith.constant 0 : i32
    %c0_i32_2 = arith.constant 0 : i32
    return %c0_i32, %c0_i32_0, %c0_i32_1 : i32, i32, i32
  }
  func.func @transform_4(%arg0: i32) -> (i32, i32, i32) {
    %c0_i32 = arith.constant 0 : i32
    %c0_i32_0 = arith.constant 0 : i32
    %c0_i32_1 = arith.constant 0 : i32
    return %arg0, %c0_i32, %c0_i32_0 : i32, i32, i32
  }
  func.func @transform_5(%arg0: i32) -> (i32, i32, i32) {
    %c0_i32 = arith.constant 0 : i32
    %c0_i32_0 = arith.constant 0 : i32
    %c0_i32_1 = arith.constant 0 : i32
    return %arg0, %c0_i32, %c0_i32_0 : i32, i32, i32
  }
}

module attributes {stable_mosaic.version = 11 : i64} {
  func.func @_bn_add_relu_proj_kernel(%arg0: i32, %arg1: memref<128x128xf32, #tpu.memory_space<vmem>>, %arg2: memref<1x128xf32, #tpu.memory_space<vmem>>, %arg3: memref<1x128xf32, #tpu.memory_space<vmem>>, %arg4: memref<128x128xf32, #tpu.memory_space<vmem>>, %arg5: memref<1x128xf32, #tpu.memory_space<vmem>>, %arg6: memref<1x128xf32, #tpu.memory_space<vmem>>, %arg7: memref<128x128xf32, #tpu.memory_space<vmem>>) attributes {dimension_semantics = [#tpu.dimension_semantics<parallel>], iteration_bounds = array<i64: 1>, scalar_prefetch = 0 : i64, scratch_operands = 0 : i64, tpu.core_type = #tpu.core_type<tc>, window_params = [{transform_indices = @transform_0, window_bounds = array<i64: 128, 128>}, {pipeline_mode = #tpu.pipeline_mode<synchronous>, transform_indices = @transform_1, window_bounds = array<i64: 1, 128>}, {pipeline_mode = #tpu.pipeline_mode<synchronous>, transform_indices = @transform_2, window_bounds = array<i64: 1, 128>}, {transform_indices = @transform_3, window_bounds = array<i64: 128, 128>}, {pipeline_mode = #tpu.pipeline_mode<synchronous>, transform_indices = @transform_4, window_bounds = array<i64: 1, 128>}, {pipeline_mode = #tpu.pipeline_mode<synchronous>, transform_indices = @transform_5, window_bounds = array<i64: 1, 128>}, {transform_indices = @transform_6, window_bounds = array<i64: 128, 128>}]} {
    %c0 = arith.constant 0 : index
    %c0_0 = arith.constant 0 : index
    %0 = vector.load %arg1[%c0, %c0_0] : memref<128x128xf32, #tpu.memory_space<vmem>>, vector<128x128xf32>
    %c0_1 = arith.constant 0 : index
    %c0_2 = arith.constant 0 : index
    %1 = vector.load %arg2[%c0_1, %c0_2] : memref<1x128xf32, #tpu.memory_space<vmem>>, vector<1x128xf32>
    %2 = vector.broadcast %1 : vector<1x128xf32> to vector<128x128xf32>
    %3 = arith.mulf %0, %2 : vector<128x128xf32>
    %c0_3 = arith.constant 0 : index
    %c0_4 = arith.constant 0 : index
    %4 = vector.load %arg3[%c0_3, %c0_4] : memref<1x128xf32, #tpu.memory_space<vmem>>, vector<1x128xf32>
    %5 = vector.broadcast %4 : vector<1x128xf32> to vector<128x128xf32>
    %6 = arith.addf %3, %5 : vector<128x128xf32>
    %c0_5 = arith.constant 0 : index
    %c0_6 = arith.constant 0 : index
    %7 = vector.load %arg4[%c0_5, %c0_6] : memref<128x128xf32, #tpu.memory_space<vmem>>, vector<128x128xf32>
    %c0_7 = arith.constant 0 : index
    %c0_8 = arith.constant 0 : index
    %8 = vector.load %arg5[%c0_7, %c0_8] : memref<1x128xf32, #tpu.memory_space<vmem>>, vector<1x128xf32>
    %9 = vector.broadcast %8 : vector<1x128xf32> to vector<128x128xf32>
    %10 = arith.mulf %7, %9 : vector<128x128xf32>
    %c0_9 = arith.constant 0 : index
    %c0_10 = arith.constant 0 : index
    %11 = vector.load %arg6[%c0_9, %c0_10] : memref<1x128xf32, #tpu.memory_space<vmem>>, vector<1x128xf32>
    %12 = vector.broadcast %11 : vector<1x128xf32> to vector<128x128xf32>
    %13 = arith.addf %10, %12 : vector<128x128xf32>
    %14 = arith.addf %6, %13 : vector<128x128xf32>
    %cst = arith.constant 0.000000e+00 : f32
    %15 = vector.broadcast %cst : f32 to vector<128x128xf32>
    %16 = arith.maximumf %14, %15 : vector<128x128xf32>
    %c0_11 = arith.constant 0 : index
    %c0_12 = arith.constant 0 : index
    %17 = vector.load %arg7[%c0_11, %c0_12] : memref<128x128xf32, #tpu.memory_space<vmem>>, vector<128x128xf32>
    tpu.vector_store %arg7[%c0_11, %c0_12], %16 {strides = array<i32>} : memref<128x128xf32, #tpu.memory_space<vmem>>, vector<128x128xf32>,
    return
  }
  func.func @transform_0(%arg0: i32) -> (i32, i32) {
    %c0_i32 = arith.constant 0 : i32
    %c0_i32_0 = arith.constant 0 : i32
    return %arg0, %c0_i32 : i32, i32
  }
  func.func @transform_1(%arg0: i32) -> (i32, i32) {
    %c0_i32 = arith.constant 0 : i32
    %c0_i32_0 = arith.constant 0 : i32
    %c0_i32_1 = arith.constant 0 : i32
    return %c0_i32, %c0_i32_0 : i32, i32
  }
  func.func @transform_2(%arg0: i32) -> (i32, i32) {
    %c0_i32 = arith.constant 0 : i32
    %c0_i32_0 = arith.constant 0 : i32
    %c0_i32_1 = arith.constant 0 : i32
    return %c0_i32, %c0_i32_0 : i32, i32
  }
  func.func @transform_3(%arg0: i32) -> (i32, i32) {
    %c0_i32 = arith.constant 0 : i32
    %c0_i32_0 = arith.constant 0 : i32
    return %arg0, %c0_i32 : i32, i32
  }
  func.func @transform_4(%arg0: i32) -> (i32, i32) {
    %c0_i32 = arith.constant 0 : i32
    %c0_i32_0 = arith.constant 0 : i32
    %c0_i32_1 = arith.constant 0 : i32
    return %c0_i32, %c0_i32_0 : i32, i32
  }
  func.func @transform_5(%arg0: i32) -> (i32, i32) {
    %c0_i32 = arith.constant 0 : i32
    %c0_i32_0 = arith.constant 0 : i32
    %c0_i32_1 = arith.constant 0 : i32
    return %c0_i32, %c0_i32_0 : i32, i32
  }
  func.func @transform_6(%arg0: i32) -> (i32, i32) {
    %c0_i32 = arith.constant 0 : i32
    %c0_i32_0 = arith.constant 0 : i32
    return %arg0, %c0_i32 : i32, i32
  }
}

</mosaic_0001>

<bundles_post_ra>
// kernel: basic_block_forward.5
= control target key start
LH: loop header
LB: loop body
LE: loop exit
PB: predicated region body
PF: predicated region fallthrough
CT: control target
= control target key end

     0   :  { %s466_s0 = inlined_call_operand.vmem [shape: f32[128,128], index: 0, kind: input, shape index: {}]   ;;  %s467_s1 = inlined_call_operand.vmem [shape: f32[1,128], index: 1, kind: input, shape index: {}]   ;;  %s468_s2 = inlined_call_operand.vmem [shape: f32[1,128], index: 2, kind: input, shape index: {}]   ;;  %s469_s3 = inlined_call_operand.vmem [shape: f32[128,128], index: 3, kind: input, shape index: {}]   ;;  %s470_s4 = inlined_call_operand.vmem [shape: f32[1,128], index: 4, kind: input, shape index: {}]   ;;  %s471_s5 = inlined_call_operand.vmem [shape: f32[1,128], index: 5, kind: input, shape index: {}]   ;;  %s472_s6 = inlined_call_operand.vmem [shape: f32[128,128], index: 6, kind: output, shape index: {}]  }
   0x1   :  { %v23_v0 = vld [vmem:[%s466_s0] sm:$0xff]  ;;  %v24_v8 = vld [vmem:[%s466_s0 + $0x8] sm:$0xff]  ;;  %v25_v10 = vld [vmem:[%s466_s0 + $0x10] sm:$0xff] }
   0x2   :  { %v244_v1 = vld [vmem:[%s467_s1] ss:$0 sm:$0xff]  ;;  %v86_v9 = vld [vmem:[%s469_s3 + $0x8] sm:$0xff]  ;;  %v87_v15 = vld [vmem:[%s469_s3 + $0x10] sm:$0xff] }
   0x3   :  { %v249_v2 = vld [vmem:[%s468_s2] ss:$0 sm:$0xff]  ;;  %v46_v3 = vmul.f32 %v244_v1, %v23_v0  ;;  %v47_v12 = vmul.f32 %v244_v1, %v24_v8  ;;  %v48_v14 = vmul.f32 %v244_v1, %v25_v10  ;;  %v26_v16 = vld [vmem:[%s466_s0 + $0x18] sm:$0xff]  ;;  %v28_v24 = vld [vmem:[%s466_s0 + $0x28] sm:$0xff] }
   0x4   :  { %v85_v4 = vld [vmem:[%s469_s3] sm:$0xff]  ;;  %v88_v17 = vld [vmem:[%s469_s3 + $0x18] sm:$0xff]  ;;  %v49_v20 = vmul.f32 %v244_v1, %v26_v16  ;;  %v90_v29 = vld [vmem:[%s469_s3 + $0x28] sm:$0xff]  ;;  %v51_v38 = vmul.f32 %v244_v1, %v28_v24 }
   0x5   :  { %v258_v5 = vld [vmem:[%s470_s4] ss:$0 sm:$0xff]  ;;  %v69_v11 = vadd.f32 %v249_v2, %v46_v3  ;;  %v70_v25 = vadd.f32 %v249_v2, %v47_v12  ;;  %v71_v27 = vadd.f32 %v249_v2, %v48_v14  ;;  %v29_v34 = vld [vmem:[%s466_s0 + $0x30] sm:$0xff]  ;;  %v30_v44 = vld [vmem:[%s466_s0 + $0x38] sm:$0xff] }
   0x6   :  { %v263_v6 = vld [vmem:[%s471_s5] ss:$0 sm:$0xff]  ;;  %v108_v7 = vmul.f32 %v258_v5, %v85_v4  ;;  %v109_v13 = vmul.f32 %v258_v5, %v86_v9  ;;  %v110_v19 = vmul.f32 %v258_v5, %v87_v15  ;;  %v111_v21 = vmul.f32 %v258_v5, %v88_v17  ;;  %v91_v39 = vld [vmem:[%s469_s3 + $0x30] sm:$0xff]  ;;  %v92_v45 = vld [vmem:[%s469_s3 + $0x38] sm:$0xff] }
   0x7   :  { %v27_v22 = vld [vmem:[%s466_s0 + $0x20] sm:$0xff]  ;;  %v72_v32 = vadd.f32 %v249_v2, %v49_v20  ;;  %v113_v43 = vmul.f32 %v258_v5, %v90_v29  ;;  %v74_v48 = vadd.f32 %v249_v2, %v51_v38  ;;  %v52_v49 = vmul.f32 %v244_v1, %v29_v34  ;;  %v32_v56 = vld [vmem:[%s466_s0 + $0x48] sm:$0xff]  ;;  %v33_v4 = vld [vmem:[%s466_s0 + $0x50] sm:$0xff] }
   0x8   :  { %v131_v18 = vadd.f32 %v263_v6, %v108_v7  ;;  %v89_v23 = vld [vmem:[%s469_s3 + $0x20] sm:$0xff]  ;;  %v132_v26 = vadd.f32 %v263_v6, %v109_v13  ;;  %v50_v28 = vmul.f32 %v244_v1, %v27_v22  ;;  %v133_v31 = vadd.f32 %v263_v6, %v110_v19  ;;  %v94_v3 = vld [vmem:[%s469_s3 + $0x48] sm:$0xff]  ;;  %v34_v12 = vld [vmem:[%s466_s0 + $0x58] sm:$0xff] }
   0x9   :  { %v134_v33 = vadd.f32 %v263_v6, %v111_v21  ;;  %v112_v37 = vmul.f32 %v258_v5, %v89_v23  ;;  %v31_v50 = vld [vmem:[%s466_s0 + $0x40] sm:$0xff]  ;;  %v136_v54 = vadd.f32 %v263_v6, %v113_v43  ;;  %v114_v55 = vmul.f32 %v258_v5, %v91_v39  ;;  %v96_v17 = vld [vmem:[%s469_s3 + $0x58] sm:$0xff]  ;;  %v37_v34 = vld [vmem:[%s466_s0 + $0x70] sm:$0xff] }
   0xa   :  { %v147_v30 = vadd.f32 %v131_v18, %v69_v11  ;;  %v148_v35 = vadd.f32 %v132_v26, %v70_v25  ;;  %v73_v36 = vadd.f32 %v249_v2, %v50_v28  ;;  %v149_v41 = vadd.f32 %v133_v31, %v71_v27  ;;  %v93_v51 = vld [vmem:[%s469_s3 + $0x40] sm:$0xff]  ;;  %v95_v11 = vld [vmem:[%s469_s3 + $0x50] sm:$0xff]  ;;  %v36_v28 = vld [vmem:[%s466_s0 + $0x68] sm:$0xff] }
   0xb   :  { %v150_v42 = vadd.f32 %v134_v33, %v72_v32  ;;  %v135_v47 = vadd.f32 %v263_v6, %v112_v37  ;;  %v75_v58 = vadd.f32 %v249_v2, %v52_v49  ;;  %v53_v59 = vmul.f32 %v244_v1, %v30_v44  ;;  %v35_v22 = vld [vmem:[%s466_s0 + $0x60] sm:$0xff]  ;;  %v98_v33 = vld [vmem:[%s469_s3 + $0x68] sm:$0xff]  ;;  %v99_v43 = vld [vmem:[%s469_s3 + $0x70] sm:$0xff] }
   0xc   :  { %v163_v40 = vmax.f32 %v147_v30, 0.0  ;;  %v164_v46 = vmax.f32 %v148_v35, 0.0  ;;  %v165_v52 = vmax.f32 %v149_v41, 0.0  ;;  %v115_v60 = vmul.f32 %v258_v5, %v92_v45  ;;  %v97_v27 = vld [vmem:[%s469_s3 + $0x60] sm:$0xff]  ;;  %v100_v49 = vld [vmem:[%s469_s3 + $0x78] sm:$0xff] }
   0xd   :  { %v166_v53 = vmax.f32 %v150_v42, 0.0  ;;  %v151_v57 = vadd.f32 %v135_v47, %v73_v36  ;;  %v152_v61 = vadd.f32 %v136_v54, %v74_v48  ;;  %v137_v62 = vadd.f32 %v263_v6, %v114_v55  ;;  %v38_v48 = vld [vmem:[%s466_s0 + $0x78] sm:$0xff] }
   0xe   :  { %179 = vst [vmem:[%s472_s6] sm:$0xff] %v163_v40  ;;  %180 = vst [vmem:[%s472_s6 + $0x8] sm:$0xff] %v164_v46  ;;  %v54_v63 = vmul.f32 %v244_v1, %v31_v50  ;;  %v116_v0 = vmul.f32 %v258_v5, %v93_v51  ;;  %v76_v8 = vadd.f32 %v249_v2, %v53_v59 }
   0xf   :  { %181 = vst [vmem:[%s472_s6 + $0x10] sm:$0xff] %v165_v52  ;;  %182 = vst [vmem:[%s472_s6 + $0x18] sm:$0xff] %v166_v53  ;;  %v167_v7 = vmax.f32 %v151_v57, 0.0  ;;  %v138_v9 = vadd.f32 %v263_v6, %v115_v60  ;;  %v55_v10 = vmul.f32 %v244_v1, %v32_v56  ;;  %v168_v13 = vmax.f32 %v152_v61, 0.0 }
  0x10   :  { %v153_v14 = vadd.f32 %v137_v62, %v75_v58  ;;  %v77_v15 = vadd.f32 %v249_v2, %v54_v63  ;;  %v139_v16 = vadd.f32 %v263_v6, %v116_v0  ;;  %v117_v20 = vmul.f32 %v258_v5, %v94_v3 }
  0x11   :  { %183 = vst [vmem:[%s472_s6 + $0x20] sm:$0xff] %v167_v7  ;;  %v154_v18 = vadd.f32 %v138_v9, %v76_v8  ;;  %v78_v19 = vadd.f32 %v249_v2, %v55_v10  ;;  %v56_v21 = vmul.f32 %v244_v1, %v33_v4  ;;  %184 = vst [vmem:[%s472_s6 + $0x28] sm:$0xff] %v168_v13 }
  0x12   :  { %v169_v23 = vmax.f32 %v153_v14, 0.0  ;;  %v155_v24 = vadd.f32 %v139_v16, %v77_v15  ;;  %v118_v25 = vmul.f32 %v258_v5, %v95_v11  ;;  %v57_v26 = vmul.f32 %v244_v1, %v34_v12 }
  0x13   :  { %v170_v29 = vmax.f32 %v154_v18, 0.0  ;;  %v140_v30 = vadd.f32 %v263_v6, %v117_v20  ;;  %v79_v31 = vadd.f32 %v249_v2, %v56_v21  ;;  %v119_v32 = vmul.f32 %v258_v5, %v96_v17 }
  0x14   :  { %185 = vst [vmem:[%s472_s6 + $0x30] sm:$0xff] %v169_v23  ;;  %v171_v35 = vmax.f32 %v155_v24, 0.0  ;;  %v141_v36 = vadd.f32 %v263_v6, %v118_v25  ;;  %v80_v37 = vadd.f32 %v249_v2, %v57_v26  ;;  %v58_v38 = vmul.f32 %v244_v1, %v35_v22 }
  0x15   :  { %186 = vst [vmem:[%s472_s6 + $0x38] sm:$0xff] %v170_v29  ;;  %v156_v39 = vadd.f32 %v140_v30, %v78_v19  ;;  %v142_v40 = vadd.f32 %v263_v6, %v119_v32  ;;  %v120_v41 = vmul.f32 %v258_v5, %v97_v27  ;;  %v59_v42 = vmul.f32 %v244_v1, %v36_v28 }
  0x16   :  { %187 = vst [vmem:[%s472_s6 + $0x40] sm:$0xff] %v171_v35  ;;  %v157_v44 = vadd.f32 %v141_v36, %v79_v31  ;;  %v81_v45 = vadd.f32 %v249_v2, %v58_v38  ;;  %v121_v46 = vmul.f32 %v258_v5, %v98_v33  ;;  %v60_v47 = vmul.f32 %v244_v1, %v37_v34 }
  0x17   :  { %v172_v50 = vmax.f32 %v156_v39, 0.0  ;;  %v158_v51 = vadd.f32 %v142_v40, %v80_v37  ;;  %v143_v52 = vadd.f32 %v263_v6, %v120_v41  ;;  %v82_v53 = vadd.f32 %v249_v2, %v59_v42 }
  0x18   :  { %v173_v54 = vmax.f32 %v157_v44, 0.0  ;;  %v144_v55 = vadd.f32 %v263_v6, %v121_v46  ;;  %v83_v56 = vadd.f32 %v249_v2, %v60_v47  ;;  %v122_v57 = vmul.f32 %v258_v5, %v99_v43 }
  0x19   :  { %188 = vst [vmem:[%s472_s6 + $0x48] sm:$0xff] %v172_v50  ;;  %v174_v58 = vmax.f32 %v158_v51, 0.0  ;;  %v159_v59 = vadd.f32 %v143_v52, %v81_v45  ;;  %v61_v60 = vmul.f32 %v244_v1, %v38_v48  ;;  %v123_v61 = vmul.f32 %v258_v5, %v100_v49 }
  0x1a   :  { %189 = vst [vmem:[%s472_s6 + $0x50] sm:$0xff] %v173_v54  ;;  %v160_v62 = vadd.f32 %v144_v55, %v82_v53  ;;  %v145_v63 = vadd.f32 %v263_v6, %v122_v57 }
  0x1b   :  { %190 = vst [vmem:[%s472_s6 + $0x58] sm:$0xff] %v174_v58  ;;  %v175_v0 = vmax.f32 %v159_v59, 0.0  ;;  %v84_v3 = vadd.f32 %v249_v2, %v61_v60  ;;  %v146_v4 = vadd.f32 %v263_v6, %v123_v61 }
  0x1c   :  { %v176_v7 = vmax.f32 %v160_v62, 0.0  ;;  %v161_v1 = vadd.f32 %v145_v63, %v83_v56 }
  0x1d   :  { %191 = vst [vmem:[%s472_s6 + $0x60] sm:$0xff] %v175_v0  ;;  %v162_v5 = vadd.f32 %v146_v4, %v84_v3 }
  0x1e   :  { %192 = vst [vmem:[%s472_s6 + $0x68] sm:$0xff] %v176_v7  ;;  %v177_v8 = vmax.f32 %v161_v1, 0.0 }
  0x1f   :  { %v178_v9 = vmax.f32 %v162_v5, 0.0 }
  0x20   :  { %193 = vst [vmem:[%s472_s6 + $0x70] sm:$0xff] %v177_v8 }
  0x21   :  { %194 = vst [vmem:[%s472_s6 + $0x78] sm:$0xff] %v178_v9 }

// kernel: basic_block_forward.3
= control target key start
LH: loop header
LB: loop body
LE: loop exit
PB: predicated region body
PF: predicated region fallthrough
CT: control target
= control target key end

     0   :  { %vm123_vm0 = vcmask 1041408   ;;  %vm358_vm1 = vcmask 31744   ;;  %vm98_vm2 = vcmask 293888   ;;  %vm298_vm3 = vcmask 1040384   ;;  %s911_s3 = inlined_call_operand.vmem [shape: bf16[4,128], index: 3, kind: input, shape index: {}]   ;;  %s912_s2 = inlined_call_operand.vmem [shape: bf16[36,128], index: 2, kind: input, shape index: {}]   ;;  %s913_s1 = inlined_call_operand.vmem [shape: bf16[128,4], index: 1, kind: input, shape index: {}]   ;;  %s914_s0 = inlined_call_operand.vmem [shape: bf16[128,36], index: 0, kind: input, shape index: {}]   ;;  %s915_s5 = inlined_call_operand.vmem [shape: f32[128,128], index: 5, kind: output, shape index: {1}]   ;;  %s916_s4 = inlined_call_operand.vmem [shape: f32[128,128], index: 4, kind: output, shape index: {0}]   ;;  %s917_s7 = inlined_call_operand.vmem [shape: f32[1,2,128], index: 7, kind: output, shape index: {3}]   ;;  %s918_s6 = inlined_call_operand.vmem [shape: f32[1,2,128], index: 6, kind: output, shape index: {2}]  }
   0x1   :  { %v317_v0 = vld [vmem:[%s911_s3] sm:$0x3]  ;;  %v672_v2 = vld [vmem:[%s912_s2 + $0x10] ss:$0 sps:$4 sm:$0x33]   ;;  %v674_v5 = vld [vmem:[%s913_s1 + $0x8] sm:$0xff]  }
   0x2   :  { %671 = vmatprep.subr.msk.bf16.mxu1 %vm123_vm0, %v317_v0  ;;  %v384_v1 = vsel %vm123_vm0, %v317_v0, 0  ;;  %v673_v3 = vld [vmem:[%s913_s1] sm:$0xff]   ;;  %670 = vmatprep.subr.msk.bf16.mxu0 %vm123_vm0, %v672_v2  ;;  %v125_v4 = vsel %vm123_vm0, %v672_v2, 0  ;;  %v675_v6 = vld [vmem:[%s912_s2 + $0x8] sm:$0xff]   ;;  %v677_v8 = vld [vmem:[%s913_s1 + $0x10] sm:$0xff]  }
   0x3   :  { %653 = vmatpush3.bf16.msra.mxu1 %v384_v1  ;;  %631 = vmatpush3.bf16.msra.mxu0 %v125_v4  ;;  %v676_v7 = vld [vmem:[%s912_s2] sm:$0xff]   ;;  %v678_v10 = vld [vmem:[%s913_s1 + $0x18] sm:$0xff]   ;;  %v680_v12 = vld [vmem:[%s914_s0 + $0x8] sm:$0xff]  }
   0x4   :  { %654 = vmatprep.mubr.msk.bf16.mxu1 %vm358_vm1, %v673_v3  ;;  %632 = vmatprep.subr.bf16.mxu0 %v675_v6  ;;  %v679_v9 = vld [vmem:[%s914_s0] sm:$0xff]   ;;  %v683_v13 = vld [vmem:[%s914_s0 + $0x10] sm:$0xff]   ;;  %v682_v14 = vld [vmem:[%s913_s1 + $0x28] sm:$0xff]  }
   0x5   :  { %636 = vmatprep.mubr.msk.bf16.mxu0 %vm98_vm2, %v679_v9  ;;  %v681_v11 = vld [vmem:[%s913_s1 + $0x20] sm:$0xff]   ;;  %v685_v15 = vld [vmem:[%s913_s1 + $0x30] sm:$0xff]   ;;  %v684_v16 = vld [vmem:[%s914_s0 + $0x18] sm:$0xff]  }
   0x6   :  { %655 = vmatmul.mubr.msk.bf16.vlgmr.msra.gmra.mxu1 %vm358_vm1, %v674_v5  ;;  %v687_v17 = vld [vmem:[%s914_s0 + $0x20] sm:$0xff]   ;;  %v686_v18 = vld [vmem:[%s913_s1 + $0x38] sm:$0xff]   ;;  %v688_v19 = vld [vmem:[%s914_s0 + $0x28] sm:$0xff]  }
   0x7   :  { %633 = vmatpush3.bf16.msra.mxu0 %v675_v6  ;;  %658 = vmatprep.mubr.msk.bf16.mxu1 %vm358_vm1, %v677_v8  ;;  %v689_v20 = vld [vmem:[%s914_s0 + $0x30] sm:$0xff]   ;;  %v690_v21 = vld [vmem:[%s914_s0 + $0x38] sm:$0xff]  }
   0x8   :  { %634 = vmatprep.subr.bf16.mxu0 %v676_v7 }
   0xb   :  { %635 = vmatpush3.bf16.msra.mxu0 %v676_v7 }
   0xe   :  { %659 = vmatmul.mubr.msk.bf16.gmra.mxu1 %vm358_vm1, %v678_v10  ;;  %637 = vmatmul.mubr.msk.bf16.vlgmr.msra.gmra.mxu0 %vm98_vm2, %v680_v12 }
   0xf   :  { %662 = vmatprep.mubr.msk.bf16.mxu1 %vm358_vm1, %v681_v11  ;;  %640 = vmatprep.mubr.msk.bf16.mxu0 %vm98_vm2, %v683_v13 }
  0x16   :  { %663 = vmatmul.mubr.msk.bf16.gmra.mxu1 %vm358_vm1, %v682_v14  ;;  %641 = vmatmul.mubr.msk.bf16.gmra.mxu0 %vm98_vm2, %v684_v16 }
  0x17   :  { %666 = vmatprep.mubr.msk.bf16.mxu1 %vm358_vm1, %v685_v15  ;;  %644 = vmatprep.mubr.msk.bf16.mxu0 %vm98_vm2, %v687_v17 }
  0x1e   :  { %667 = vmatmul.mubr.msk.bf16.gmra.mxu1 %vm358_vm1, %v686_v18  ;;  %645 = vmatmul.mubr.msk.bf16.gmra.mxu0 %vm98_vm2, %v688_v19 }
  0x1f   :  { %648 = vmatprep.mubr.msk.bf16.mxu0 %vm98_vm2, %v689_v20 }
  0x26   :  { %649 = vmatmul.mubr.msk.bf16.gmra.mxu0 %vm98_vm2, %v690_v21 }
  0xc6   :  { %v656_v22 = vpop.f32.mrf.mxu1 }
  0xc7   :  { %485 = vst [vmem:[%s915_s5 + $0x10] sm:$0xff] %v656_v22  ;;  %v522_v27 = vmul.f32 %v656_v22, %v656_v22 }
  0xc8   :  { %v420_v23 = vpop.f32.mrf.mxu1 }
  0xc9   :  { %483 = vst [vmem:[%s915_s5] sm:$0xff] %v420_v23  ;;  %v520_v25 = vmul.f32 %v420_v23, %v420_v23 }
  0xca   :  { %v657_v24 = vpop.f32.mrf.mxu1 }
  0xcb   :  { %486 = vst [vmem:[%s915_s5 + $0x18] sm:$0xff] %v657_v24  ;;  %v523_v31 = vmul.f32 %v657_v24, %v657_v24 }
  0xcc   :  { %v423_v26 = vpop.f32.mrf.mxu1 }
  0xcd   :  { %484 = vst [vmem:[%s915_s5 + $0x8] sm:$0xff] %v423_v26  ;;  %v499_v28 = vadd.f32 %v423_v26, %v420_v23  ;;  %v521_v29 = vmul.f32 %v423_v26, %v423_v26 }
  0xce   :  { %v660_v30 = vpop.f32.mrf.mxu1  ;;  %v638_v34 = vpop.f32.mrf.mxu0 }
  0xcf   :  { %v500_v32 = vadd.f32 %v656_v22, %v499_v28  ;;  %v536_v33 = vadd.f32 %v521_v29, %v520_v25  ;;  %489 = vst [vmem:[%s915_s5 + $0x30] sm:$0xff] %v660_v30  ;;  %226 = vst [vmem:[%s916_s4 + $0x10] sm:$0xff] %v638_v34  ;;  %v526_v45 = vmul.f32 %v660_v30, %v660_v30 }
  0xd0   :  { %v436_v35 = vpop.f32.mrf.mxu1  ;;  %v161_v39 = vpop.f32.mrf.mxu0  ;;  %v263_v59 = vmul.f32 %v638_v34, %v638_v34 }
  0xd1   :  { %v537_v36 = vadd.f32 %v536_v33, %v522_v27  ;;  %487 = vst [vmem:[%s915_s5 + $0x20] sm:$0xff] %v436_v35  ;;  %v501_v37 = vadd.f32 %v657_v24, %v500_v32  ;;  %v524_v38 = vmul.f32 %v436_v35, %v436_v35  ;;  %224 = vst [vmem:[%s916_s4] sm:$0xff] %v161_v39 }
  0xd2   :  { %v661_v40 = vpop.f32.mrf.mxu1  ;;  %v639_v43 = vpop.f32.mrf.mxu0  ;;  %v261_v49 = vmul.f32 %v161_v39, %v161_v39 }
  0xd3   :  { %v502_v41 = vadd.f32 %v501_v37, %v436_v35  ;;  %v538_v42 = vadd.f32 %v537_v36, %v523_v31  ;;  %490 = vst [vmem:[%s915_s5 + $0x38] sm:$0xff] %v661_v40  ;;  %227 = vst [vmem:[%s916_s4 + $0x18] sm:$0xff] %v639_v43  ;;  %v527_v50 = vmul.f32 %v661_v40, %v661_v40 }
  0xd4   :  { %v439_v44 = vpop.f32.mrf.mxu1  ;;  %v164_v51 = vpop.f32.mrf.mxu0  ;;  %v264_v3 = vmul.f32 %v639_v43, %v639_v43 }
  0xd5   :  { %v539_v46 = vadd.f32 %v538_v42, %v524_v38  ;;  %488 = vst [vmem:[%s915_s5 + $0x28] sm:$0xff] %v439_v44  ;;  %v503_v47 = vadd.f32 %v502_v41, %v439_v44  ;;  %v525_v48 = vmul.f32 %v439_v44, %v439_v44  ;;  %225 = vst [vmem:[%s916_s4 + $0x8] sm:$0xff] %v164_v51 }
  0xd6   :  { %v664_v52 = vpop.f32.mrf.mxu1  ;;  %v240_v55 = vadd.f32 %v164_v51, %v161_v39  ;;  %v262_v56 = vmul.f32 %v164_v51, %v164_v51  ;;  %v642_v57 = vpop.f32.mrf.mxu0 }
  0xd7   :  { %v504_v53 = vadd.f32 %v660_v30, %v503_v47  ;;  %v540_v54 = vadd.f32 %v539_v46, %v525_v48  ;;  %493 = vst [vmem:[%s915_s5 + $0x50] sm:$0xff] %v664_v52  ;;  %230 = vst [vmem:[%s916_s4 + $0x30] sm:$0xff] %v642_v57  ;;  %v530_v14 = vmul.f32 %v664_v52, %v664_v52 }
  0xd8   :  { %v452_v58 = vpop.f32.mrf.mxu1  ;;  %v241_v61 = vadd.f32 %v638_v34, %v240_v55  ;;  %v277_v62 = vadd.f32 %v262_v56, %v261_v49  ;;  %v177_v1 = vpop.f32.mrf.mxu0  ;;  %v267_v27 = vmul.f32 %v642_v57, %v642_v57 }
  0xd9   :  { %v541_v60 = vadd.f32 %v540_v54, %v526_v45  ;;  %491 = vst [vmem:[%s915_s5 + $0x40] sm:$0xff] %v452_v58  ;;  %v505_v63 = vadd.f32 %v661_v40, %v504_v53  ;;  %v528_v0 = vmul.f32 %v452_v58, %v452_v58  ;;  %228 = vst [vmem:[%s916_s4 + $0x20] sm:$0xff] %v177_v1 }
  0xda   :  { %v665_v2 = vpop.f32.mrf.mxu1  ;;  %v278_v4 = vadd.f32 %v277_v62, %v263_v59  ;;  %v242_v6 = vadd.f32 %v639_v43, %v241_v61  ;;  %v643_v8 = vpop.f32.mrf.mxu0  ;;  %v265_v12 = vmul.f32 %v177_v1, %v177_v1 }
  0xdb   :  { %v542_v5 = vadd.f32 %v541_v60, %v527_v50  ;;  %494 = vst [vmem:[%s915_s5 + $0x58] sm:$0xff] %v665_v2  ;;  %v506_v7 = vadd.f32 %v505_v63, %v452_v58  ;;  %231 = vst [vmem:[%s916_s4 + $0x38] sm:$0xff] %v643_v8  ;;  %v531_v22 = vmul.f32 %v665_v2, %v665_v2 }
  0xdc   :  { %v455_v9 = vpop.f32.mrf.mxu1  ;;  %v243_v11 = vadd.f32 %v242_v6, %v177_v1  ;;  %v279_v13 = vadd.f32 %v278_v4, %v264_v3  ;;  %v180_v17 = vpop.f32.mrf.mxu0  ;;  %v268_v35 = vmul.f32 %v643_v8, %v643_v8 }
  0xdd   :  { %v543_v10 = vadd.f32 %v542_v5, %v528_v0  ;;  %492 = vst [vmem:[%s915_s5 + $0x48] sm:$0xff] %v455_v9  ;;  %v507_v15 = vadd.f32 %v506_v7, %v455_v9  ;;  %v529_v16 = vmul.f32 %v455_v9, %v455_v9  ;;  %229 = vst [vmem:[%s916_s4 + $0x28] sm:$0xff] %v180_v17 }
  0xde   :  { %v668_v18 = vpop.f32.mrf.mxu1  ;;  %v280_v19 = vadd.f32 %v279_v13, %v265_v12  ;;  %v244_v20 = vadd.f32 %v243_v11, %v180_v17  ;;  %v266_v21 = vmul.f32 %v180_v17, %v180_v17  ;;  %v646_v25 = vpop.f32.mrf.mxu0 }
  0xdf   :  { %497 = vst [vmem:[%s915_s5 + $0x70] sm:$0xff] %v668_v18  ;;  %v508_v23 = vadd.f32 %v664_v52, %v507_v15  ;;  %v544_v24 = vadd.f32 %v543_v10, %v529_v16  ;;  %234 = vst [vmem:[%s916_s4 + $0x50] sm:$0xff] %v646_v25  ;;  %v534_v46 = vmul.f32 %v668_v18, %v668_v18 }
  0xe0   :  { %v468_v26 = vpop.f32.mrf.mxu1  ;;  %v245_v28 = vadd.f32 %v642_v57, %v244_v20  ;;  %v281_v29 = vadd.f32 %v280_v19, %v266_v21  ;;  %v193_v33 = vpop.f32.mrf.mxu0  ;;  %v271_v57 = vmul.f32 %v646_v25, %v646_v25 }
  0xe1   :  { %495 = vst [vmem:[%s915_s5 + $0x60] sm:$0xff] %v468_v26  ;;  %v545_v30 = vadd.f32 %v544_v24, %v530_v14  ;;  %v509_v31 = vadd.f32 %v665_v2, %v508_v23  ;;  %v532_v32 = vmul.f32 %v468_v26, %v468_v26  ;;  %232 = vst [vmem:[%s916_s4 + $0x40] sm:$0xff] %v193_v33 }
  0xe2   :  { %v669_v34 = vpop.f32.mrf.mxu1  ;;  %v282_v36 = vadd.f32 %v281_v29, %v267_v27  ;;  %v246_v37 = vadd.f32 %v643_v8, %v245_v28  ;;  %v647_v40 = vpop.f32.mrf.mxu0  ;;  %v269_v43 = vmul.f32 %v193_v33, %v193_v33 }
  0xe3   :  { %498 = vst [vmem:[%s915_s5 + $0x78] sm:$0xff] %v669_v34  ;;  %v510_v38 = vadd.f32 %v509_v31, %v468_v26  ;;  %v546_v39 = vadd.f32 %v545_v30, %v531_v22  ;;  %235 = vst [vmem:[%s916_s4 + $0x58] sm:$0xff] %v647_v40  ;;  %v535_v53 = vmul.f32 %v669_v34, %v669_v34 }
  0xe4   :  { %v471_v41 = vpop.f32.mrf.mxu1  ;;  %v247_v42 = vadd.f32 %v246_v37, %v193_v33  ;;  %v283_v44 = vadd.f32 %v282_v36, %v268_v35  ;;  %v196_v49 = vpop.f32.mrf.mxu0  ;;  %v272_v63 = vmul.f32 %v647_v40, %v647_v40 }
  0xe5   :  { %496 = vst [vmem:[%s915_s5 + $0x68] sm:$0xff] %v471_v41  ;;  %v533_v45 = vmul.f32 %v471_v41, %v471_v41  ;;  %v547_v47 = vadd.f32 %v546_v39, %v532_v32  ;;  %v511_v48 = vadd.f32 %v510_v38, %v471_v41  ;;  %233 = vst [vmem:[%s916_s4 + $0x48] sm:$0xff] %v196_v49 }
  0xe6   :  { %v284_v50 = vadd.f32 %v283_v44, %v269_v43  ;;  %v248_v51 = vadd.f32 %v247_v42, %v196_v49  ;;  %v270_v52 = vmul.f32 %v196_v49, %v196_v49  ;;  %v650_v56 = vpop.f32.mrf.mxu0 }
  0xe7   :  { %v512_v54 = vadd.f32 %v668_v18, %v511_v48  ;;  %v548_v55 = vadd.f32 %v547_v47, %v533_v45  ;;  %238 = vst [vmem:[%s916_s4 + $0x70] sm:$0xff] %v650_v56  ;;  %v275_v16 = vmul.f32 %v650_v56, %v650_v56 }
  0xe8   :  { %v249_v58 = vadd.f32 %v646_v25, %v248_v51  ;;  %v285_v59 = vadd.f32 %v284_v50, %v270_v52  ;;  %v209_v62 = vpop.f32.mrf.mxu0 }
  0xe9   :  { %v513_v60 = vadd.f32 %v669_v34, %v512_v54  ;;  %v549_v61 = vadd.f32 %v548_v55, %v534_v46  ;;  %236 = vst [vmem:[%s916_s4 + $0x60] sm:$0xff] %v209_v62  ;;  %v273_v6 = vmul.f32 %v209_v62, %v209_v62 }
  0xea   :  { %v286_v0 = vadd.f32 %v285_v59, %v271_v57  ;;  %v250_v1 = vadd.f32 %v647_v40, %v249_v58  ;;  %v651_v4 = vpop.f32.mrf.mxu0 }
  0xeb   :  { %v514_v2 = vrot.slane %v513_v60, 4  ;;  %v550_v3 = vadd.f32 %v549_v61, %v535_v53  ;;  %239 = vst [vmem:[%s916_s4 + $0x78] sm:$0xff] %v651_v4  ;;  %v276_v21 = vmul.f32 %v651_v4, %v651_v4 }
  0xec   :  { %v251_v5 = vadd.f32 %v250_v1, %v209_v62  ;;  %v287_v7 = vadd.f32 %v286_v0, %v272_v63  ;;  %v212_v10 = vpop.f32.mrf.mxu0 }
  0xed   :  { %v515_v8 = vadd.f32 %v514_v2, %v513_v60  ;;  %v551_v9 = vrot.slane %v550_v3, 4  ;;  %237 = vst [vmem:[%s916_s4 + $0x68] sm:$0xff] %v212_v10  ;;  %v274_v13 = vmul.f32 %v212_v10, %v212_v10 }
  0xee   :  { %v288_v11 = vadd.f32 %v287_v7, %v273_v6  ;;  %v252_v12 = vadd.f32 %v251_v5, %v212_v10 }
  0xef   :  { %v516_v14 = vrot.slane %v515_v8, 2  ;;  %v552_v15 = vadd.f32 %v551_v9, %v550_v3 }
  0xf0   :  { %v253_v17 = vadd.f32 %v650_v56, %v252_v12  ;;  %v289_v18 = vadd.f32 %v288_v11, %v274_v13 }
  0xf1   :  { %v517_v19 = vadd.f32 %v516_v14, %v515_v8  ;;  %v553_v20 = vrot.slane %v552_v15, 2 }
  0xf2   :  { %v254_v22 = vadd.f32 %v651_v4, %v253_v17  ;;  %v290_v23 = vadd.f32 %v289_v18, %v275_v16 }
  0xf3   :  { %v518_v24 = vrot.slane %v517_v19, 1  ;;  %v554_v25 = vadd.f32 %v553_v20, %v552_v15 }
  0xf4   :  { %v255_v26 = vrot.slane %v254_v22, 4  ;;  %v291_v27 = vadd.f32 %v290_v23, %v276_v21 }
  0xf5   :  { %v555_v28 = vrot.slane %v554_v25, 1  ;;  %v519_v31 = vadd.f32 %v518_v24, %v517_v19 }
  0xf6   :  { %v256_v29 = vadd.f32 %v255_v26, %v254_v22  ;;  %v292_v30 = vrot.slane %v291_v27, 4 }
  0xf7   :  { %v556_v32 = vadd.f32 %v555_v28, %v554_v25 }
  0xf8   :  { %v257_v33 = vrot.slane %v256_v29, 2  ;;  %v293_v34 = vadd.f32 %v292_v30, %v291_v27 }
  0xf9   :  { %v557_v35 = vsel %vm298_vm3, %v519_v31, %v556_v32 }
  0xfa   :  { %558 = vst [vmem:[%s917_s7] sm:$0x3] %v557_v35  ;;  %v258_v36 = vadd.f32 %v257_v33, %v256_v29  ;;  %v294_v37 = vrot.slane %v293_v34, 2 }
  0xfc   :  { %v259_v38 = vrot.slane %v258_v36, 1  ;;  %v295_v39 = vadd.f32 %v294_v37, %v293_v34 }
  0xfe   :  { %v296_v40 = vrot.slane %v295_v39, 1  ;;  %v260_v41 = vadd.f32 %v259_v38, %v258_v36 }
 0x100   :  { %v297_v42 = vadd.f32 %v296_v40, %v295_v39 }
 0x102   :  { %v299_v43 = vsel %vm298_vm3, %v260_v41, %v297_v42 }
 0x103   :  { %300 = vst [vmem:[%s918_s6] sm:$0x3] %v299_v43 }

// kernel: basic_block_forward.4
= control target key start
LH: loop header
LB: loop body
LE: loop exit
PB: predicated region body
PF: predicated region fallthrough
CT: control target
= control target key end

     0   :  { %s2453_s18 = smov 0   ;;  %s2928_s0 = inlined_call_operand.vmem [shape: f32[2,8,8,128], index: 0, kind: input, shape index: {}]   ;;  %s2929_s1 = inlined_call_operand.vmem [shape: f32[1,128], index: 1, kind: input, shape index: {}]   ;;  %s2930_s2 = inlined_call_operand.vmem [shape: f32[1,128], index: 2, kind: input, shape index: {}]   ;;  %s2931_s3 = inlined_call_operand.vmem [shape: bf16[9,128,128], index: 3, kind: input, shape index: {}]   ;;  %s2932_s4 = inlined_call_operand.vmem [shape: f32[2,64,128], index: 4, kind: output, shape index: {0}]   ;;  %s2933_s5 = inlined_call_operand.vmem [shape: f32[2,2,128], index: 5, kind: output, shape index: {1}]  }
   0x1 LB: > { %s1777_s19 = sadd.s32 4294967295, %s2420_s18   ;;  %p1781_p0 = scmp.ge.s32.totalorder %s2420_s18, 1  ;;  %s2420_s18 = sphi %s2453_s18, %s16_s18  }
   0x2   : > { %p190_p1 = scmp.lt.s32.totalorder %s2420_s18, 3 }
   0x4   : > { %p191_p2 = pnand %p1781_p0, %p190_p1 }
   0x6   : > { %194 = sbr.rel (%p191_p2) target bundleno = 403 (0x193), region = 36 }
   0xb   : > { %v2342_v0 = vld [vmem:[%s2931_s3 + $0x78] sm:$0xff]   ;;  %v2344_v2 = vld [vmem:[%s2931_s3 + $0x70] sm:$0xff]   ;;  %p2472_p3 = scmp.lt.s32.totalorder %s1777_s19, 1  ;;  %v2422_v3 = vmov 0.0   ;;  %v2346_v5 = vld [vmem:[%s2931_s3 + $0x68] sm:$0xff]   ;;  %vm1688_vm0 = vcmask 1040384  }
   0xc   : > { %v2343_v1 = vld [vmem:[%s2931_s3 + $0x38] sm:$0xff]   ;;  %2101 = vmatprep.subr.bf16.mxu0 %v2342_v0  ;;  %283 = vst [vmem:[#allocation2] sm:$0xff] %v2422_v3  ;;  %284 = vst [vmem:[#allocation2 + $0x8] sm:$0x3] %v2422_v3  ;;  %v2345_v4 = vld [vmem:[%s2931_s3 + $0x30] sm:$0xff]  }
   0xd   : > { %285 = vst [vmem:[#allocation2 + $0x10] sm:$0xff] %v2422_v3  ;;  %286 = vst [vmem:[#allocation2 + $0x18] sm:$0x3] %v2422_v3  ;;  %2125 = vmatprep.subr.bf16.mxu1 %v2343_v1  ;;  %2102 = vmatpush3.bf16.msra.mxu0 %v2342_v0  ;;  %v2347_v6 = vld [vmem:[%s2931_s3 + $0x28] sm:$0xff]   ;;  %s2948_s19 = smov (!%p2472_p3, %s1777_s19), 1  ;;  %v2348_v7 = vld [vmem:[%s2931_s3 + $0x60] sm:$0xff]  }
   0xe   : > { %287 = vst [vmem:[#allocation2 + $0x20] sm:$0xff] %v2422_v3  ;;  %288 = vst [vmem:[#allocation2 + $0x28] sm:$0x3] %v2422_v3  ;;  %2126 = vmatpush3.bf16.msra.mxu1 %v2343_v1  ;;  %2103 = vmatprep.subr.bf16.mxu0 %v2344_v2  ;;  %v2349_v8 = vld [vmem:[%s2931_s3 + $0x20] sm:$0xff]   ;;  %s1991_s12 = sshll.u32 %s2948_s19, 6  ;;  %v2350_v9 = vld [vmem:[%s2931_s3 + $0x58] sm:$0xff]  }
   0xf   : > { %289 = vst [vmem:[#allocation2 + $0x30] sm:$0xff] %v2422_v3  ;;  %290 = vst [vmem:[#allocation2 + $0x38] sm:$0x3] %v2422_v3  ;;  %2127 = vmatprep.subr.bf16.mxu1 %v2345_v4  ;;  %v2351_v10 = vld [vmem:[%s2931_s3 + $0x18] sm:$0xff]   ;;  %s2529_s21 = scalar_lea.vmem %s2928_s0, %s1991_s12  ;;  %v2352_v11 = vld [vmem:[%s2931_s3 + $0x50] sm:$0xff]   ;;  %s2908_s20 = scalar_lea.vmem %s2932_s4, %s1991_s12 }
  0x10   : > { %291 = vst [vmem:[#allocation2 + $0x40] sm:$0xff] %v2422_v3  ;;  %292 = vst [vmem:[#allocation2 + $0x48] sm:$0x3] %v2422_v3  ;;  %v237_v12 = vld [vmem:[%s2529_s21] sm:$0xff]  ;;  %v2353_v15 = vld [vmem:[%s2931_s3 + $0x10] sm:$0xff]   ;;  %s1786_s12 = sshll.u32 %s2948_s19, 1 }
  0x11   : > { %293 = vst [vmem:[#allocation2 + $0x50] sm:$0xff] %v2422_v3  ;;  %294 = vst [vmem:[#allocation2 + $0x58] sm:$0x3] %v2422_v3  ;;  %2104 = vmatpush3.bf16.msra.mxu0 %v2344_v2  ;;  %v2538_v13 = vld [vmem:[%s2929_s1] ss:$0 sm:$0xff]  ;;  %v238_v17 = vld [vmem:[%s2529_s21 + $0x8] sm:$0xff]  ;;  %s235_s24 = scalar_lea.vmem %s2933_s5, %s1786_s12 }
  0x12   : > { %295 = vst [vmem:[#allocation2 + $0x60] sm:$0xff] %v2422_v3  ;;  %296 = vst [vmem:[#allocation2 + $0x68] sm:$0x3] %v2422_v3  ;;  %2128 = vmatpush3.bf16.msra.mxu1 %v2345_v4  ;;  %2105 = vmatprep.subr.bf16.mxu0 %v2346_v5  ;;  %v2543_v14 = vld [vmem:[%s2930_s2] ss:$0 sm:$0xff]  ;;  %v252_v16 = vmul.f32 %v2538_v13, %v237_v12  ;;  %v239_v18 = vld [vmem:[%s2529_s21 + $0x10] sm:$0xff]  ;;  %v253_v19 = vmul.f32 %v2538_v13, %v238_v17 }
  0x13   : > { %297 = vst [vmem:[#allocation2 + $0x70] sm:$0xff] %v2422_v3  ;;  %298 = vst [vmem:[#allocation2 + $0x78] sm:$0x3] %v2422_v3  ;;  %2129 = vmatprep.subr.bf16.mxu1 %v2347_v6  ;;  %v254_v20 = vmul.f32 %v2538_v13, %v239_v18  ;;  %v2354_v21 = vld [vmem:[%s2931_s3 + $0x48] sm:$0xff]   ;;  %v2356_v31 = vld [vmem:[%s2931_s3 + $0x40] sm:$0xff]  }
  0x14   : > { %299 = vst [vmem:[#allocation2 + $0x80] sm:$0xff] %v2422_v3  ;;  %300 = vst [vmem:[#allocation2 + $0x88] sm:$0x3] %v2422_v3  ;;  %v267_v22 = vadd.f32 %v2543_v14, %v252_v16  ;;  %v340_v23 = vld [vmem:[#allocation2 + $0x1] sm:$0xff]  ;;  %v268_v24 = vadd.f32 %v2543_v14, %v253_v19  ;;  %v2358_v33 = vld [vmem:[%s2931_s3 + $0xb8] sm:$0xff]  }
  0x15   : > { %301 = vst [vmem:[#allocation2 + $0x90] sm:$0xff] %v2422_v3  ;;  %302 = vst [vmem:[#allocation2 + $0x98] sm:$0x3] %v2422_v3  ;;  %2106 = vmatpush3.bf16.msra.mxu0 %v2346_v5  ;;  %v269_v25 = vadd.f32 %v2543_v14, %v254_v20  ;;  %v2355_v26 = vld [vmem:[%s2931_s3 + $0x8] sm:$0xff]   ;;  %v2357_v32 = vld [vmem:[%s2931_s3] sm:$0xff]  }
  0x16   : > { %2130 = vmatpush3.bf16.msra.mxu1 %v2347_v6  ;;  %2107 = vmatprep.subr.bf16.mxu0 %v2348_v7  ;;  %v2562_v27 = vmax.f32 %v267_v22, 0.0  ;;  %v2564_v28 = vmax.f32 %v268_v24, 0.0  ;;  %v2359_v34 = vld [vmem:[%s2931_s3 + $0xf8] sm:$0xff]   ;;  %v241_v36 = vld [vmem:[%s2529_s21 + $0x20] sm:$0xff]  ;;  %v242_v39 = vld [vmem:[%s2529_s21 + $0x28] sm:$0xff] }
  0x17   : > { %2131 = vmatprep.subr.bf16.mxu1 %v2349_v8  ;;  %v2566_v29 = vmax.f32 %v269_v25, 0.0  ;;  %v240_v35 = vld [vmem:[%s2529_s21 + $0x18] sm:$0xff]  ;;  %v256_v38 = vmul.f32 %v2538_v13, %v241_v36  ;;  %v243_v40 = vld [vmem:[%s2529_s21 + $0x30] sm:$0xff]  ;;  %v257_v43 = vmul.f32 %v2538_v13, %v242_v39  ;;  %v2362_v60 = vld [vmem:[%s2931_s3 + $0xa8] sm:$0xff]  }
  0x18   : > { %304 = vst [vmem:[#allocation2 + $0x11] sm:$0xff] %v2562_v27  ;;  %v348_v30 = vpack.c.bf16 %v2562_v27, %v340_v23  ;;  %305 = vst [vmem:[#allocation2 + $0x21] sm:$0xff] %v2564_v28  ;;  %v255_v37 = vmul.f32 %v2538_v13, %v240_v35  ;;  %v258_v44 = vmul.f32 %v2538_v13, %v243_v40  ;;  %v2360_v51 = vld [vmem:[%s2931_s3 + $0xb0] sm:$0xff]   ;;  %v2363_v62 = vld [vmem:[%s2931_s3 + $0xe8] sm:$0xff]  }
  0x19   : > { %2108 = vmatpush3.bf16.msra.mxu0 %v2348_v7  ;;  %306 = vst [vmem:[#allocation2 + $0x31] sm:$0xff] %v2566_v29  ;;  %v2594_v42 = vpack.c.bf16 %v2566_v29, %v2564_v28  ;;  %v271_v49 = vadd.f32 %v2543_v14, %v256_v38  ;;  %v272_v52 = vadd.f32 %v2543_v14, %v257_v43  ;;  %v2361_v54 = vld [vmem:[%s2931_s3 + $0xf0] sm:$0xff]   ;;  %v595_v63 = vld [vmem:[#allocation2 + $0x2] sm:$0xff]  ;;  %v2366_v12 = vld [vmem:[%s2931_s3 + $0x98] sm:$0xff]  }
  0x1a   : > { %2132 = vmatpush3.bf16.msra.mxu1 %v2349_v8  ;;  %2109 = vmatprep.subr.bf16.mxu0 %v2350_v9  ;;  %v270_v48 = vadd.f32 %v2543_v14, %v255_v37  ;;  %v273_v53 = vadd.f32 %v2543_v14, %v258_v44  ;;  %v2364_v4 = vld [vmem:[%s2931_s3 + $0xa0] sm:$0xff]   ;;  %v2367_v16 = vld [vmem:[%s2931_s3 + $0xd8] sm:$0xff]   ;;  %v2368_v18 = vld [vmem:[%s2931_s3 + $0x90] sm:$0xff]  }
  0x1b   : > { %2133 = vmatprep.subr.bf16.mxu1 %v2351_v10  ;;  %2117 = vmatprep.mubr.bf16.mxu0 %v348_v30  ;;  %v2617_v56 = vmax.f32 %v271_v49, 0.0  ;;  %v2620_v57 = vmax.f32 %v272_v52, 0.0  ;;  %v2365_v5 = vld [vmem:[%s2931_s3 + $0xe0] sm:$0xff]   ;;  %v244_v17 = vld [vmem:[%s2529_s21 + $0x38] sm:$0xff]  ;;  %v2369_v20 = vld [vmem:[%s2931_s3 + $0xd0] sm:$0xff]  }
  0x1c   : > { %v2615_v55 = vmax.f32 %v270_v48, 0.0  ;;  %v2622_v58 = vmax.f32 %v273_v53, 0.0  ;;  %v259_v19 = vmul.f32 %v2538_v13, %v244_v17  ;;  %v2370_v22 = vld [vmem:[%s2931_s3 + $0x88] sm:$0xff]   ;;  %v2373_v24 = vld [vmem:[%s2931_s3 + $0xc0] sm:$0xff]   ;;  %v2374_v30 = vld [vmem:[%s2931_s3 + $0x138] sm:$0xff]  }
  0x1d   : > { %2110 = vmatpush3.bf16.msra.mxu0 %v2350_v9  ;;  %308 = vst [vmem:[#allocation2 + $0x51] sm:$0xff] %v2617_v56  ;;  %309 = vst [vmem:[#allocation2 + $0x61] sm:$0xff] %v2620_v57  ;;  %v905_v61 = vpack.c.bf16 %v2620_v57, %v2617_v56  ;;  %v2371_v13 = vld [vmem:[%s2931_s3 + $0xc8] sm:$0xff]   ;;  %v2376_v36 = vld [vmem:[%s2931_s3 + $0x130] sm:$0xff]  }
  0x1e   : > { %2134 = vmatpush3.bf16.msra.mxu1 %v2351_v10  ;;  %2111 = vmatprep.subr.bf16.mxu0 %v2352_v11  ;;  %307 = vst [vmem:[#allocation2 + $0x41] sm:$0xff] %v2615_v55  ;;  %v2629_v59 = vpack.c.bf16 %v2617_v56, %v2615_v55  ;;  %310 = vst [vmem:[#allocation2 + $0x71] sm:$0xff] %v2622_v58  ;;  %v2646_v1 = vpack.c.bf16 %v2622_v58, %v2620_v57  ;;  %v2377_v37 = vld [vmem:[%s2931_s3 + $0x170] sm:$0xff]   ;;  %v2378_v43 = vld [vmem:[%s2931_s3 + $0x128] sm:$0xff]  }
  0x1f   : > { %2135 = vmatprep.subr.bf16.mxu1 %v2353_v15  ;;  %v2590_v41 = vld [vmem:[#allocation2 + $0x10] sm:$0xff]  ;;  %v314_v46 = vld [vmem:[#allocation2 + $0x20] sm:$0xff]  ;;  %v2382_v53 = vld [vmem:[%s2931_s3 + $0x118] sm:$0xff]  }
  0x20   : > { %v320_v45 = vpack.c.bf16 %v2590_v41, %v2422_v3  ;;  %v2600_v47 = vld [vmem:[#allocation2 + $0x30] sm:$0xff]  ;;  %v597_v25 = vld [vmem:[#allocation2 + $0x22] sm:$0xff]  ;;  %v2398_v57 = vld [vmem:[%s2931_s3 + $0x198] sm:$0xff]  }
  0x21   : > { %2112 = vmatpush3.bf16.msra.mxu0 %v2352_v11  ;;  %v2605_v50 = vpack.c.bf16 %v2600_v47, %v314_v46  ;;  %v2642_v0 = vld [vmem:[#allocation2 + $0x12] sm:$0xff]  ;;  %v753_v11 = vpack.c.bf16 %v314_v46, %v2590_v41  ;;  %v2380_v48 = vld [vmem:[%s2931_s3 + $0x120] sm:$0xff]  }
  0x22   : > { %2136 = vmatpush3.bf16.msra.mxu1 %v2353_v15  ;;  %2113 = vmatprep.subr.bf16.mxu0 %v2354_v21  ;;  %v603_v2 = vpack.c.bf16 %v2642_v0, %v595_v63  ;;  %v2381_v49 = vld [vmem:[%s2931_s3 + $0x160] sm:$0xff]   ;;  %v1053_v52 = vpack.c.bf16 %v597_v25, %v2642_v0 }
  0x23   : > { %2137 = vmatprep.subr.bf16.mxu1 %v2355_v26  ;;  %2141 = vmatprep.mubr.bf16.mxu1 %v320_v45  ;;  %v2379_v45 = vld [vmem:[%s2931_s3 + $0x168] sm:$0xff]   ;;  %v2388_v63 = vld [vmem:[%s2931_s3 + $0x100] sm:$0xff]  }
  0x24   : > { %v2657_v7 = vld [vmem:[#allocation2 + $0x50] sm:$0xff]  ;;  %v2664_v9 = vld [vmem:[#allocation2 + $0x60] sm:$0xff] }
  0x25   : > { %2114 = vmatpush3.bf16.msra.mxu0 %v2354_v21  ;;  %v2655_v6 = vld [vmem:[#allocation2 + $0x40] sm:$0xff]  ;;  %v2666_v10 = vld [vmem:[#allocation2 + $0x70] sm:$0xff]  ;;  %v274_v21 = vadd.f32 %v2543_v14, %v259_v19  ;;  %v755_v41 = vpack.c.bf16 %v2664_v9, %v2657_v7 }
  0x26   : > { %2138 = vmatpush3.bf16.msra.mxu1 %v2355_v26  ;;  %2115 = vmatprep.subr.bf16.mxu0 %v2356_v31  ;;  %v2662_v8 = vpack.c.bf16 %v2657_v7, %v2655_v6  ;;  %v2674_v15 = vpack.c.bf16 %v2666_v10, %v2664_v9  ;;  %v2372_v14 = vld [vmem:[%s2931_s3 + $0x80] sm:$0xff]   ;;  %v2705_v26 = vld [vmem:[#allocation2 + $0x32] sm:$0xff]  ;;  %v754_v35 = vpack.c.bf16 %v2655_v6, %v2600_v47 }
  0x27   : > { %2139 = vmatprep.subr.bf16.mxu1 %v2357_v32  ;;  %v2693_v23 = vmax.f32 %v274_v21, 0.0  ;;  %v2732_v39 = vld [vmem:[#allocation2 + $0x62] sm:$0xff]  ;;  %v2735_v40 = vld [vmem:[#allocation2 + $0x72] sm:$0xff] }
  0x28   : > { %v2750_v46 = vpack.c.bf16 %v2735_v40, %v2732_v39  ;;  %v2389_v0 = vld [vmem:[%s2931_s3 + $0x140] sm:$0xff]   ;;  %v2392_v7 = vld [vmem:[%s2931_s3 + $0x1b0] sm:$0xff]   ;;  %v2406_v21 = vld [vmem:[%s2931_s3 + $0x238] sm:$0xff]  }
  0x29   : > { %2116 = vmatpush3.bf16.msra.mxu0 %v2356_v31  ;;  %311 = vst [vmem:[#allocation2 + $0x81] sm:$0xff] %v2693_v23  ;;  %v2375_v31 = vld [vmem:[%s2931_s3 + $0x178] sm:$0xff]   ;;  %v2393_v9 = vld [vmem:[%s2931_s3 + $0x1f0] sm:$0xff]   ;;  %v2396_v17 = vld [vmem:[%s2931_s3 + $0x1a0] sm:$0xff]  }
  0x2a   : > { %2140 = vmatpush3.bf16.msra.mxu1 %v2357_v32  ;;  %2149 = vmatprep.subr.bf16.mxu0 %v2358_v33  ;;  %v2713_v32 = vld [vmem:[#allocation2 + $0x42] sm:$0xff] }
  0x2b   : > { %2173 = vmatprep.subr.bf16.mxu1 %v2359_v34  ;;  %v1054_v6 = vpack.c.bf16 %v2713_v32, %v2705_v26  ;;  %v2397_v56 = vld [vmem:[%s2931_s3 + $0x1e0] sm:$0xff]  }
  0x2c   : > { %2118 = vmatmul.mubr.bf16.vlgmr.msra.gmra.mxu0 %v2594_v42  ;;  %v2404_v19 = vld [vmem:[%s2931_s3 + $0x180] sm:$0xff]  }
  0x2d   : > { %2142 = vmatmul.mubr.bf16.vlgmr.msra.gmra.mxu1 %v2605_v50  ;;  %2150 = vmatpush3.bf16.msra.mxu0 %v2358_v33  ;;  %v2716_v33 = vpack.c.bf16 %v2705_v26, %v597_v25  ;;  %v1503_v25 = vld [vmem:[#allocation2 + $0x92] sm:$0xff] }
  0x2e   : > { %2174 = vmatpush3.bf16.msra.mxu1 %v2359_v34  ;;  %2151 = vmatprep.subr.bf16.mxu0 %v2360_v51  ;;  %v2718_v34 = vld [vmem:[#allocation2 + $0x52] sm:$0xff] }
  0x2f   : > { %2175 = vmatprep.subr.bf16.mxu1 %v2361_v54  ;;  %2121 = vmatprep.mubr.bf16.mxu0 %v2629_v59  ;;  %v2730_v38 = vpack.c.bf16 %v2718_v34, %v2713_v32 }
  0x30   : > { %2145 = vmatprep.mubr.bf16.mxu1 %v2662_v8  ;;  %v2742_v44 = vld [vmem:[#allocation2 + $0x80] sm:$0xff] }
  0x31   : > { %2152 = vmatpush3.bf16.msra.mxu0 %v2360_v51  ;;  %v756_v47 = vpack.c.bf16 %v2742_v44, %v2666_v10  ;;  %v903_v51 = vpack.c.bf16 %v2564_v28, %v2562_v27  ;;  %v2384_v27 = vld [vmem:[%s2931_s3 + $0x110] sm:$0xff]   ;;  %v1055_v10 = vpack.c.bf16 %v2732_v39, %v2718_v34 }
  0x32   : > { %2176 = vmatpush3.bf16.msra.mxu1 %v2361_v54  ;;  %2153 = vmatprep.subr.bf16.mxu0 %v2362_v60  ;;  %v2383_v54 = vld [vmem:[%s2931_s3 + $0x158] sm:$0xff]   ;;  %v2385_v28 = vld [vmem:[%s2931_s3 + $0x150] sm:$0xff]  }
  0x33   : > { %2177 = vmatprep.subr.bf16.mxu1 %v2363_v62 }
  0x34   : > { %2122 = vmatmul.mubr.bf16.gmra.mxu0 %v2646_v1 }
  0x35   : > { %2154 = vmatpush3.bf16.msra.mxu0 %v2362_v60  ;;  %2165 = vmatprep.mubr.bf16.mxu0 %v603_v2  ;;  %v2386_v60 = vld [vmem:[%s2931_s3 + $0x108] sm:$0xff]   ;;  %v2390_v2 = vld [vmem:[%s2931_s3 + $0x1b8] sm:$0xff]  }
  0x36   : > { %2178 = vmatpush3.bf16.msra.mxu1 %v2363_v62  ;;  %2155 = vmatprep.subr.bf16.mxu0 %v2364_v4  ;;  %v2387_v62 = vld [vmem:[%s2931_s3 + $0x148] sm:$0xff]  }
  0x37   : > { %2179 = vmatprep.subr.bf16.mxu1 %v2365_v5  ;;  %2146 = vmatmul.mubr.bf16.gmra.mxu1 %v2674_v15 }
  0x38   : > { %2189 = vmatprep.mubr.bf16.mxu1 %v753_v11  ;;  %v2395_v11 = vld [vmem:[%s2931_s3 + $0x1e8] sm:$0xff]  }
  0x39   : > { %2156 = vmatpush3.bf16.msra.mxu0 %v2364_v4  ;;  %v2391_v4 = vld [vmem:[%s2931_s3 + $0x1f8] sm:$0xff]  }
  0x3a   : > { %2180 = vmatpush3.bf16.msra.mxu1 %v2365_v5  ;;  %2157 = vmatprep.subr.bf16.mxu0 %v2366_v12  ;;  %v904_v5 = vpack.c.bf16 %v2615_v55, %v2566_v29  ;;  %v2394_v29 = vld [vmem:[%s2931_s3 + $0x1a8] sm:$0xff]  }
  0x3b   : > { %2181 = vmatprep.subr.bf16.mxu1 %v2367_v16  ;;  %v2809_v55 = vld [vmem:[#allocation2 + $0x82] sm:$0xff] }
  0x3c   : > { %v1507_v26 = vpack.c.bf16 %v1503_v25, %v2809_v55 }
  0x3d   : > { %2158 = vmatpush3.bf16.msra.mxu0 %v2366_v12  ;;  %v906_v12 = vpack.c.bf16 %v2693_v23, %v2622_v58  ;;  %v2399_v58 = vld [vmem:[%s2931_s3 + $0x1d8] sm:$0xff]  }
  0x3e   : > { %2182 = vmatpush3.bf16.msra.mxu1 %v2367_v16  ;;  %2159 = vmatprep.subr.bf16.mxu0 %v2368_v18  ;;  %v1056_v16 = vpack.c.bf16 %v2809_v55, %v2735_v40 }
  0x3f   : > { %2183 = vmatprep.subr.bf16.mxu1 %v2369_v20 }
  0x41   : > { %2160 = vmatpush3.bf16.msra.mxu0 %v2368_v18  ;;  %v2401_v18 = vld [vmem:[%s2931_s3 + $0x1d0] sm:$0xff]  }
  0x42   : > { %2184 = vmatpush3.bf16.msra.mxu1 %v2369_v20  ;;  %2161 = vmatprep.subr.bf16.mxu0 %v2370_v22  ;;  %v2405_v20 = vld [vmem:[%s2931_s3 + $0x1c0] sm:$0xff]  }
  0x43   : > { %2185 = vmatprep.subr.bf16.mxu1 %v2371_v13 }
  0x45   : > { %2162 = vmatpush3.bf16.msra.mxu0 %v2370_v22  ;;  %v2407_v22 = vld [vmem:[%s2931_s3 + $0x230] sm:$0xff]  }
  0x46   : > { %2186 = vmatpush3.bf16.msra.mxu1 %v2371_v13  ;;  %2163 = vmatprep.subr.bf16.mxu0 %v2372_v14  ;;  %v2408_v13 = vld [vmem:[%s2931_s3 + $0x228] sm:$0xff]  }
  0x47   : > { %2187 = vmatprep.subr.bf16.mxu1 %v2373_v24 }
  0x49   : > { %2164 = vmatpush3.bf16.msra.mxu0 %v2372_v14  ;;  %v1353_v14 = vld [vmem:[#allocation2 + $0x91] sm:$0xff] }
  0x4a   : > { %2188 = vmatpush3.bf16.msra.mxu1 %v2373_v24  ;;  %2197 = vmatprep.subr.bf16.mxu0 %v2374_v30  ;;  %v1207_v24 = vpack.c.bf16 %v2422_v3, %v2742_v44  ;;  %v2410_v3 = vld [vmem:[%s2931_s3 + $0x218] sm:$0xff]  }
  0x4b   : > { %2221 = vmatprep.subr.bf16.mxu1 %v2375_v31 }
  0x4c   : > { %2166 = vmatmul.mubr.bf16.vlgmr.msra.gmra.mxu0 %v2716_v33 }
  0x4d   : > { %2190 = vmatmul.mubr.bf16.vlgmr.msra.gmra.mxu1 %v754_v35  ;;  %2198 = vmatpush3.bf16.msra.mxu0 %v2374_v30 }
  0x4e   : > { %2222 = vmatpush3.bf16.msra.mxu1 %v2375_v31  ;;  %2199 = vmatprep.subr.bf16.mxu0 %v2376_v36 }
  0x4f   : > { %2223 = vmatprep.subr.bf16.mxu1 %v2377_v37  ;;  %2169 = vmatprep.mubr.bf16.mxu0 %v2730_v38 }
  0x50   : > { %2193 = vmatprep.mubr.bf16.mxu1 %v755_v41 }
  0x51   : > { %2200 = vmatpush3.bf16.msra.mxu0 %v2376_v36 }
  0x52   : > { %2224 = vmatpush3.bf16.msra.mxu1 %v2377_v37  ;;  %2201 = vmatprep.subr.bf16.mxu0 %v2378_v43 }
  0x53   : > { %2225 = vmatprep.subr.bf16.mxu1 %v2379_v45 }
  0x54   : > { %2170 = vmatmul.mubr.bf16.gmra.mxu0 %v2750_v46 }
  0x55   : > { %2202 = vmatpush3.bf16.msra.mxu0 %v2378_v43  ;;  %2194 = vmatmul.mubr.bf16.gmra.mxu1 %v756_v47 }
  0x56   : > { %2226 = vmatpush3.bf16.msra.mxu1 %v2379_v45  ;;  %2203 = vmatprep.subr.bf16.mxu0 %v2380_v48 }
  0x57   : > { %2227 = vmatprep.subr.bf16.mxu1 %v2381_v49  ;;  %2213 = vmatprep.mubr.bf16.mxu0 %v903_v51 }
  0x58   : > { %2237 = vmatprep.mubr.bf16.mxu1 %v1053_v52 }
  0x59   : > { %2204 = vmatpush3.bf16.msra.mxu0 %v2380_v48 }
  0x5a   : > { %2228 = vmatpush3.bf16.msra.mxu1 %v2381_v49  ;;  %2205 = vmatprep.subr.bf16.mxu0 %v2382_v53 }
  0x5b   : > { %2229 = vmatprep.subr.bf16.mxu1 %v2383_v54 }
  0x5d   : > { %2206 = vmatpush3.bf16.msra.mxu0 %v2382_v53 }
  0x5e   : > { %2230 = vmatpush3.bf16.msra.mxu1 %v2383_v54  ;;  %2207 = vmatprep.subr.bf16.mxu0 %v2384_v27 }
  0x5f   : > { %2231 = vmatprep.subr.bf16.mxu1 %v2385_v28 }
  0x61   : > { %2208 = vmatpush3.bf16.msra.mxu0 %v2384_v27 }
  0x62   : > { %2232 = vmatpush3.bf16.msra.mxu1 %v2385_v28  ;;  %2209 = vmatprep.subr.bf16.mxu0 %v2386_v60 }
  0x63   : > { %2233 = vmatprep.subr.bf16.mxu1 %v2387_v62 }
  0x65   : > { %2210 = vmatpush3.bf16.msra.mxu0 %v2386_v60 }
  0x66   : > { %2234 = vmatpush3.bf16.msra.mxu1 %v2387_v62  ;;  %2211 = vmatprep.subr.bf16.mxu0 %v2388_v63 }
  0x67   : > { %2235 = vmatprep.subr.bf16.mxu1 %v2389_v0 }
  0x69   : > { %2212 = vmatpush3.bf16.msra.mxu0 %v2388_v63 }
  0x6a   : > { %2236 = vmatpush3.bf16.msra.mxu1 %v2389_v0  ;;  %2245 = vmatprep.subr.bf16.mxu0 %v2390_v2 }
  0x6b   : > { %2269 = vmatprep.subr.bf16.mxu1 %v2391_v4 }
  0x6c   : > { %2214 = vmatmul.mubr.bf16.vlgmr.msra.gmra.mxu0 %v904_v5 }
  0x6d   : > { %2238 = vmatmul.mubr.bf16.vlgmr.msra.gmra.mxu1 %v1054_v6  ;;  %2246 = vmatpush3.bf16.msra.mxu0 %v2390_v2 }
  0x6e   : > { %2270 = vmatpush3.bf16.msra.mxu1 %v2391_v4  ;;  %2247 = vmatprep.subr.bf16.mxu0 %v2392_v7 }
  0x6f   : > { %2271 = vmatprep.subr.bf16.mxu1 %v2393_v9  ;;  %2217 = vmatprep.mubr.bf16.mxu0 %v905_v61  ;;  %v2400_v61 = vld [vmem:[%s2931_s3 + $0x190] sm:$0xff]  }
  0x70   : > { %2241 = vmatprep.mubr.bf16.mxu1 %v1055_v10 }
  0x71   : > { %2248 = vmatpush3.bf16.msra.mxu0 %v2392_v7 }
  0x72   : > { %2272 = vmatpush3.bf16.msra.mxu1 %v2393_v9  ;;  %2249 = vmatprep.subr.bf16.mxu0 %v2394_v29 }
  0x73   : > { %2273 = vmatprep.subr.bf16.mxu1 %v2395_v11 }
  0x74   : > { %2218 = vmatmul.mubr.bf16.gmra.mxu0 %v906_v12 }
  0x75   : > { %2250 = vmatpush3.bf16.msra.mxu0 %v2394_v29  ;;  %2242 = vmatmul.mubr.bf16.gmra.mxu1 %v1056_v16 }
  0x76   : > { %2274 = vmatpush3.bf16.msra.mxu1 %v2395_v11  ;;  %2251 = vmatprep.subr.bf16.mxu0 %v2396_v17 }
  0x77   : > { %2275 = vmatprep.subr.bf16.mxu1 %v2397_v56  ;;  %2261 = vmatprep.mubr.bf16.mxu0 %v2605_v50  ;;  %v2402_v50 = vld [vmem:[%s2931_s3 + $0x188] sm:$0xff]  }
  0x78   : > { %2285 = vmatprep.mubr.bf16.mxu1 %v2594_v42  ;;  %v2403_v42 = vld [vmem:[%s2931_s3 + $0x1c8] sm:$0xff]  }
  0x79   : > { %2252 = vmatpush3.bf16.msra.mxu0 %v2396_v17 }
  0x7a   : > { %2276 = vmatpush3.bf16.msra.mxu1 %v2397_v56  ;;  %2253 = vmatprep.subr.bf16.mxu0 %v2398_v57 }
  0x7b   : > { %2277 = vmatprep.subr.bf16.mxu1 %v2399_v58 }
  0x7d   : > { %2254 = vmatpush3.bf16.msra.mxu0 %v2398_v57 }
  0x7e   : > { %2278 = vmatpush3.bf16.msra.mxu1 %v2399_v58  ;;  %2255 = vmatprep.subr.bf16.mxu0 %v2400_v61 }
  0x7f   : > { %2279 = vmatprep.subr.bf16.mxu1 %v2401_v18 }
  0x81   : > { %2256 = vmatpush3.bf16.msra.mxu0 %v2400_v61 }
  0x82   : > { %2280 = vmatpush3.bf16.msra.mxu1 %v2401_v18  ;;  %2257 = vmatprep.subr.bf16.mxu0 %v2402_v50 }
  0x83   : > { %2281 = vmatprep.subr.bf16.mxu1 %v2403_v42 }
  0x85   : > { %2258 = vmatpush3.bf16.msra.mxu0 %v2402_v50 }
  0x86   : > { %2282 = vmatpush3.bf16.msra.mxu1 %v2403_v42  ;;  %2259 = vmatprep.subr.bf16.mxu0 %v2404_v19 }
  0x87   : > { %2283 = vmatprep.subr.bf16.mxu1 %v2405_v20 }
  0x89   : > { %2260 = vmatpush3.bf16.msra.mxu0 %v2404_v19 }
  0x8a   : > { %2284 = vmatpush3.bf16.msra.mxu1 %v2405_v20  ;;  %2293 = vmatprep.subr.bf16.mxu0 %v2406_v21 }
  0x8b   : > { %2317 = vmatprep.subr.bf16.mxu1 %v2406_v21 }
  0x8c   : > { %2262 = vmatmul.mubr.bf16.vlgmr.msra.gmra.mxu0 %v2662_v8  ;;  %v1357_v8 = vpack.c.bf16 %v1353_v14, %v2693_v23  ;;  %v2413_v23 = vld [vmem:[%s2931_s3 + $0x200] sm:$0xff]  }
  0x8d   : > { %2286 = vmatmul.mubr.bf16.vlgmr.msra.gmra.mxu1 %v2629_v59  ;;  %2294 = vmatpush3.bf16.msra.mxu0 %v2406_v21  ;;  %v2409_v59 = vld [vmem:[%s2931_s3 + $0x220] sm:$0xff]  }
  0x8e   : > { %2325 = vmatpush3.bf16.msra.mxu1 %v2406_v21  ;;  %2295 = vmatprep.subr.bf16.mxu0 %v2407_v22 }
  0x8f   : > { %2318 = vmatprep.subr.bf16.mxu1 %v2407_v22  ;;  %2265 = vmatprep.mubr.bf16.mxu0 %v2674_v15  ;;  %v2412_v15 = vld [vmem:[%s2931_s3 + $0x208] sm:$0xff]  }
  0x90   : > { %2289 = vmatprep.mubr.bf16.mxu1 %v2646_v1  ;;  %v2411_v1 = vld [vmem:[%s2931_s3 + $0x210] sm:$0xff]  }
  0x91   : > { %2296 = vmatpush3.bf16.msra.mxu0 %v2407_v22 }
  0x92   : > { %2326 = vmatpush3.bf16.msra.mxu1 %v2407_v22  ;;  %2297 = vmatprep.subr.bf16.mxu0 %v2408_v13 }
  0x93   : > { %2319 = vmatprep.subr.bf16.mxu1 %v2408_v13 }
  0x94   : > { %2266 = vmatmul.mubr.bf16.gmra.mxu0 %v1207_v24 }
  0x95   : > { %2298 = vmatpush3.bf16.msra.mxu0 %v2408_v13  ;;  %2290 = vmatmul.mubr.bf16.gmra.mxu1 %v1357_v8 }
  0x96   : > { %2327 = vmatpush3.bf16.msra.mxu1 %v2408_v13  ;;  %2299 = vmatprep.subr.bf16.mxu0 %v2409_v59 }
  0x97   : > { %2320 = vmatprep.subr.bf16.mxu1 %v2409_v59  ;;  %2309 = vmatprep.mubr.bf16.mxu0 %v2716_v33 }
  0x98   : > { %2313 = vmatprep.mubr.bf16.mxu1 %v2750_v46 }
  0x99   : > { %2300 = vmatpush3.bf16.msra.mxu0 %v2409_v59 }
  0x9a   : > { %2328 = vmatpush3.bf16.msra.mxu1 %v2409_v59  ;;  %2301 = vmatprep.subr.bf16.mxu0 %v2410_v3 }
  0x9b   : > { %2321 = vmatprep.subr.bf16.mxu1 %v2410_v3 }
  0x9d   : > { %2302 = vmatpush3.bf16.msra.mxu0 %v2410_v3 }
  0x9e   : > { %2329 = vmatpush3.bf16.msra.mxu1 %v2410_v3  ;;  %2303 = vmatprep.subr.bf16.mxu0 %v2411_v1 }
  0x9f   : > { %2322 = vmatprep.subr.bf16.mxu1 %v2411_v1 }
  0xa1   : > { %2304 = vmatpush3.bf16.msra.mxu0 %v2411_v1 }
  0xa2   : > { %2330 = vmatpush3.bf16.msra.mxu1 %v2411_v1  ;;  %2305 = vmatprep.subr.bf16.mxu0 %v2412_v15 }
  0xa3   : > { %2323 = vmatprep.subr.bf16.mxu1 %v2412_v15 }
  0xa5   : > { %2306 = vmatpush3.bf16.msra.mxu0 %v2412_v15 }
  0xa6   : > { %2331 = vmatpush3.bf16.msra.mxu1 %v2412_v15  ;;  %2307 = vmatprep.subr.bf16.mxu0 %v2413_v23 }
  0xa7   : > { %2324 = vmatprep.subr.bf16.mxu1 %v2413_v23 }
  0xa9   : > { %2308 = vmatpush3.bf16.msra.mxu0 %v2413_v23 }
  0xaa   : > { %2332 = vmatpush3.bf16.msra.mxu1 %v2413_v23 }
  0xac   : > { %2310 = vmatmul.mubr.bf16.vlgmr.msra.gmra.mxu0 %v2730_v38 }
  0xad   : > { %2314 = vmatmul.mubr.bf16.vlgmr.msra.gmra.mxu1 %v1507_v26 }
  0xec   : > { %v2119_v30 = vpop.f32.mrf.mxu0 }
  0xed   : > { %v2143_v31 = vpop.f32.mrf.mxu1 }
  0xee   : > { %v451_v32 = vpop.f32.mrf.mxu0  ;;  %v573_v14 = vadd.f32 %v2143_v31, %v2119_v30 }
  0xef   : > { %v564_v33 = vpop.f32.mrf.mxu1 }
  0xf0   : > { %v2120_v34 = vpop.f32.mrf.mxu0  ;;  %v565_v59 = vadd.f32 %v564_v33, %v451_v32 }
  0xf1   : > { %v2144_v35 = vpop.f32.mrf.mxu1 }
  0xf2   : > { %v454_v36 = vpop.f32.mrf.mxu0  ;;  %v576_v25 = vadd.f32 %v2144_v35, %v2120_v34 }
  0xf3   : > { %v567_v37 = vpop.f32.mrf.mxu1 }
  0xf4   : > { %v2123_v39 = vpop.f32.mrf.mxu0 }
  0xf6   : > { %v467_v41 = vpop.f32.mrf.mxu0 }
  0xf7   : > { %v2147_v40 = vpop.f32.mrf.mxu1 }
  0xf8   : > { %v2124_v44 = vpop.f32.mrf.mxu0  ;;  %v589_v24 = vadd.f32 %v2147_v40, %v2123_v39 }
  0xf9   : > { %v580_v43 = vpop.f32.mrf.mxu1 }
  0xfa   : > { %v470_v46 = vpop.f32.mrf.mxu0  ;;  %v581_v15 = vadd.f32 %v580_v43, %v467_v41 }
  0xfb   : > { %v2148_v45 = vpop.f32.mrf.mxu1 }
  0xfd   : > { %v583_v47 = vpop.f32.mrf.mxu1 }
  0xfe   : > { %v584_v39 = vadd.f32 %v583_v47, %v470_v46 }
 0x10c   : > { %v2167_v48 = vpop.f32.mrf.mxu0 }
 0x10d   : > { %v2191_v49 = vpop.f32.mrf.mxu1  ;;  %v739_v3 = vadd.f32 %v2167_v48, %v573_v14 }
 0x10e   : > { %v706_v38 = vpop.f32.mrf.mxu0 }
 0x10f   : > { %v856_v51 = vpop.f32.mrf.mxu1  ;;  %v737_v26 = vadd.f32 %v706_v38, %v565_v59 }
 0x110   : > { %v2168_v52 = vpop.f32.mrf.mxu0 }
 0x111   : > { %v2192_v53 = vpop.f32.mrf.mxu1  ;;  %v740_v30 = vadd.f32 %v2168_v52, %v576_v25  ;;  %v887_v33 = vadd.f32 %v856_v51, %v737_v26 }
 0x112   : > { %v709_v54 = vpop.f32.mrf.mxu0 }
 0x113   : > { %v2888_v27 = vpop.f32.mrf.mxu1 }
 0x114   : > { %2935 = vst [vmem:[#allocation3_spill] sm:$0xff] %v2888_v27  ;;  %v2171_v28 = vpop.f32.mrf.mxu0 }
 0x115   : > { %v2195_v60 = vpop.f32.mrf.mxu1  ;;  %v743_v23 = vadd.f32 %v2171_v28, %v589_v24  ;;  %v890_v28 = vadd.f32 %v2192_v53, %v740_v30 }
 0x116   : > { %v722_v62 = vpop.f32.mrf.mxu0 }
 0x117   : > { %v872_v63 = vpop.f32.mrf.mxu1  ;;  %v893_v40 = vadd.f32 %v2195_v60, %v743_v23 }
 0x118   : > { %v2172_v0 = vpop.f32.mrf.mxu0 }
 0x119   : > { %v2196_v2 = vpop.f32.mrf.mxu1 }
 0x11a   : > { %v725_v4 = vpop.f32.mrf.mxu0 }
 0x11b   : > { %v875_v5 = vpop.f32.mrf.mxu1  ;;  %v742_v41 = vadd.f32 %v725_v4, %v584_v39  ;;  %v2941_v38 = vld [vmem:[#allocation3_spill] sm:$0xff] }
 0x11d   : > { %v892_v52 = vadd.f32 %v875_v5, %v742_v41 }
 0x12c   : > { %v2215_v6 = vpop.f32.mrf.mxu0 }
 0x12d   : > { %v2239_v7 = vpop.f32.mrf.mxu1 }
 0x12e   : > { %v1006_v9 = vpop.f32.mrf.mxu0 }
 0x12f   : > { %v1156_v10 = vpop.f32.mrf.mxu1  ;;  %v1037_v34 = vadd.f32 %v1006_v9, %v887_v33 }
 0x130   : > { %v2216_v29 = vpop.f32.mrf.mxu0 }
 0x131   : > { %v2890_v55 = vpop.f32.mrf.mxu1  ;;  %v1187_v51 = vadd.f32 %v1156_v10, %v1037_v34 }
 0x132   : > { %2936 = vst [vmem:[#allocation4_spill] sm:$0xff] %v2890_v55  ;;  %v1009_v11 = vpop.f32.mrf.mxu0  ;;  %v741_v55 = vadd.f32 %v722_v62, %v581_v15 }
 0x133   : > { %v2892_v12 = vpop.f32.mrf.mxu1 }
 0x134   : > { %2937 = vst [vmem:[#allocation5_spill] sm:$0xff] %v2892_v12  ;;  %v2219_v16 = vpop.f32.mrf.mxu0  ;;  %v592_v12 = vadd.f32 %v2148_v45, %v2124_v44 }
 0x135   : > { %v2243_v17 = vpop.f32.mrf.mxu1  ;;  %v1043_v43 = vadd.f32 %v2219_v16, %v893_v40 }
 0x136   : > { %v1022_v56 = vpop.f32.mrf.mxu0  ;;  %v744_v32 = vadd.f32 %v2172_v0, %v592_v12 }
 0x137   : > { %v1172_v57 = vpop.f32.mrf.mxu1  ;;  %v1193_v46 = vadd.f32 %v2243_v17, %v1043_v43 }
 0x138   : > { %v2220_v58 = vpop.f32.mrf.mxu0  ;;  %v894_v44 = vadd.f32 %v2196_v2, %v744_v32 }
 0x139   : > { %v2244_v61 = vpop.f32.mrf.mxu1 }
 0x13a   : > { %v1025_v18 = vpop.f32.mrf.mxu0  ;;  %v1044_v47 = vadd.f32 %v2220_v58, %v894_v44 }
 0x13b   : > { %v1175_v50 = vpop.f32.mrf.mxu1  ;;  %v1042_v4 = vadd.f32 %v1025_v18, %v892_v52 }
 0x13d   : > { %v1192_v58 = vadd.f32 %v1175_v50, %v1042_v4 }
 0x14c   : > { %v2263_v42 = vpop.f32.mrf.mxu0 }
 0x14d   : > { %v2287_v19 = vpop.f32.mrf.mxu1 }
 0x14e   : > { %v1307_v20 = vpop.f32.mrf.mxu0 }
 0x14f   : > { %v2894_v21 = vpop.f32.mrf.mxu1  ;;  %v1338_v2 = vadd.f32 %v1307_v20, %v1187_v51 }
 0x150   : > { %2938 = vst [vmem:[#allocation6_spill] sm:$0xff] %v2894_v21  ;;  %v2264_v22 = vpop.f32.mrf.mxu0  ;;  %v568_v21 = vadd.f32 %v567_v37, %v454_v36 }
 0x151   : > { %v2896_v13 = vpop.f32.mrf.mxu1 }
 0x152   : > { %2939 = vst [vmem:[#allocation7_spill] sm:$0xff] %v2896_v13  ;;  %v1310_v8 = vpop.f32.mrf.mxu0  ;;  %v889_v13 = vadd.f32 %v2191_v49, %v739_v3  ;;  %v738_v14 = vadd.f32 %v709_v54, %v568_v21  ;;  %v1040_v49 = vadd.f32 %v2216_v29, %v890_v28 }
 0x153   : > { %v2898_v1 = vpop.f32.mrf.mxu1 }
 0x154   : > { %2940 = vst [vmem:[#allocation8_spill] sm:$0xff] %v2898_v1  ;;  %v2267_v27 = vpop.f32.mrf.mxu0  ;;  %v1039_v48 = vadd.f32 %v2215_v6, %v889_v13  ;;  %v891_v1 = vadd.f32 %v872_v63, %v741_v55  ;;  %v888_v36 = vadd.f32 %v2941_v38, %v738_v14  ;;  %v2942_v6 = vld [vmem:[#allocation4_spill] sm:$0xff]  ;;  %v1194_v55 = vadd.f32 %v2244_v61, %v1044_v47 }
 0x155   : > { %v2291_v31 = vpop.f32.mrf.mxu1  ;;  %v1344_v53 = vadd.f32 %v2267_v27, %v1193_v46  ;;  %v1190_v9 = vadd.f32 %v2942_v6, %v1040_v49 }
 0x156   : > { %v1323_v24 = vpop.f32.mrf.mxu0  ;;  %v1041_v45 = vadd.f32 %v1022_v56, %v891_v1  ;;  %v1189_v37 = vadd.f32 %v2239_v7, %v1039_v48  ;;  %v1038_v54 = vadd.f32 %v1009_v11, %v888_v36  ;;  %v2943_v7 = vld [vmem:[#allocation5_spill] sm:$0xff] }
 0x157   : > { %v1473_v35 = vpop.f32.mrf.mxu1  ;;  %v1341_v17 = vadd.f32 %v2264_v22, %v1190_v9  ;;  %v1494_v10 = vadd.f32 %v2291_v31, %v1344_v53 }
 0x158   : > { %v2268_v60 = vpop.f32.mrf.mxu0  ;;  %v1340_v62 = vadd.f32 %v2263_v42, %v1189_v37  ;;  %v1191_v0 = vadd.f32 %v1172_v57, %v1041_v45  ;;  %v1188_v29 = vadd.f32 %v2943_v7, %v1038_v54  ;;  %v2944_v57 = vld [vmem:[#allocation6_spill] sm:$0xff] }
 0x159   : > { %v2292_v63 = vpop.f32.mrf.mxu1  ;;  %v1345_v11 = vadd.f32 %v2268_v60, %v1194_v55  ;;  %v1488_v61 = vadd.f32 %v2944_v57, %v1338_v2  ;;  %v2945_v13 = vld [vmem:[#allocation7_spill] sm:$0xff] }
 0x15a   : > { %v1342_v12 = vadd.f32 %v1323_v24, %v1191_v0  ;;  %v1326_v16 = vpop.f32.mrf.mxu0  ;;  %v1490_v5 = vadd.f32 %v2287_v19, %v1340_v62  ;;  %v1339_v18 = vadd.f32 %v1310_v8, %v1188_v29  ;;  %v1491_v59 = vadd.f32 %v2945_v13, %v1341_v17 }
 0x15b   : > { %v1476_v56 = vpop.f32.mrf.mxu1  ;;  %v1343_v21 = vadd.f32 %v1326_v16, %v1192_v58  ;;  %v1495_v15 = vadd.f32 %v2292_v63, %v1345_v11  ;;  %v2946_v25 = vld [vmem:[#allocation8_spill] sm:$0xff] }
 0x15c   : > { %v1492_v20 = vadd.f32 %v1473_v35, %v1342_v12  ;;  %v1489_v26 = vadd.f32 %v2946_v25, %v1339_v18 }
 0x15d   : > { %v1493_v39 = vadd.f32 %v1476_v56, %v1343_v21 }
 0x16c   : > { %v2311_v27 = vpop.f32.mrf.mxu0 }
 0x16d   : > { %v1640_v42 = vadd.f32 %v2311_v27, %v1490_v5  ;;  %v2315_v19 = vpop.f32.mrf.mxu1 }
 0x16e   : > { %v1644_v50 = vadd.f32 %v2315_v19, %v1494_v10  ;;  %v1607_v22 = vpop.f32.mrf.mxu0 }
 0x16f   : > { %1648 = vst [vmem:[%s2908_s20 + $0x10] sm:$0xff] %v1640_v42  ;;  %v1638_v3 = vadd.f32 %v1607_v22, %v1488_v61  ;;  %v1623_v1 = vpop.f32.mrf.mxu1  ;;  %v1669_v28 = vmul.f32 %v1640_v42, %v1640_v42 }
 0x170   : > { %1652 = vst [vmem:[%s2908_s20 + $0x30] sm:$0xff] %v1644_v50  ;;  %v1642_v23 = vadd.f32 %v1623_v1, %v1492_v20  ;;  %v2312_v8 = vpop.f32.mrf.mxu0  ;;  %v1673_v60 = vmul.f32 %v1644_v50, %v1644_v50 }
 0x171   : > { %1646 = vst [vmem:[%s2908_s20] sm:$0xff] %v1638_v3  ;;  %v1641_v30 = vadd.f32 %v2312_v8, %v1491_v59  ;;  %v2316_v31 = vpop.f32.mrf.mxu1  ;;  %v1667_v41 = vmul.f32 %v1638_v3, %v1638_v3 }
 0x172   : > { %1650 = vst [vmem:[%s2908_s20 + $0x20] sm:$0xff] %v1642_v23  ;;  %v1645_v40 = vadd.f32 %v2316_v31, %v1495_v15  ;;  %v1610_v32 = vpop.f32.mrf.mxu0  ;;  %v1671_v36 = vmul.f32 %v1642_v23, %v1642_v23 }
 0x173   : > { %1649 = vst [vmem:[%s2908_s20 + $0x18] sm:$0xff] %v1641_v30  ;;  %v1639_v33 = vadd.f32 %v1610_v32, %v1489_v26  ;;  %v1626_v14 = vpop.f32.mrf.mxu1  ;;  %v1670_v44 = vmul.f32 %v1641_v30, %v1641_v30 }
 0x174   : > { %1653 = vst [vmem:[%s2908_s20 + $0x38] sm:$0xff] %v1645_v40  ;;  %v1643_v48 = vadd.f32 %v1626_v14, %v1493_v39  ;;  %v1674_v62 = vmul.f32 %v1645_v40, %v1645_v40 }
 0x175   : > { %1647 = vst [vmem:[%s2908_s20 + $0x8] sm:$0xff] %v1639_v33  ;;  %v1654_v43 = vadd.f32 %v1639_v33, %v1638_v3  ;;  %v1668_v24 = vmul.f32 %v1639_v33, %v1639_v33 }
 0x176   : > { %1651 = vst [vmem:[%s2908_s20 + $0x28] sm:$0xff] %v1643_v48  ;;  %v1672_v46 = vmul.f32 %v1643_v48, %v1643_v48 }
 0x177   : > { %v1655_v34 = vadd.f32 %v1654_v43, %v1640_v42  ;;  %v1675_v35 = vadd.f32 %v1668_v24, %v1667_v41 }
 0x179   : > { %v1676_v45 = vadd.f32 %v1675_v35, %v1669_v28  ;;  %v1656_v38 = vadd.f32 %v1655_v34, %v1641_v30 }
 0x17b   : > { %v1657_v37 = vadd.f32 %v1656_v38, %v1642_v23  ;;  %v1677_v49 = vadd.f32 %v1676_v45, %v1670_v44 }
 0x17d   : > { %v1658_v52 = vadd.f32 %v1657_v37, %v1643_v48  ;;  %v1678_v47 = vadd.f32 %v1677_v49, %v1671_v36 }
 0x17f   : > { %v1659_v51 = vadd.f32 %v1658_v52, %v1644_v50  ;;  %v1679_v54 = vadd.f32 %v1678_v47, %v1672_v46 }
 0x181   : > { %v1660_v63 = vadd.f32 %v1659_v51, %v1645_v40  ;;  %v1680_v0 = vadd.f32 %v1679_v54, %v1673_v60 }
 0x183   : > { %v1661_v4 = vrot.slane %v1660_v63, 4  ;;  %v1681_v53 = vadd.f32 %v1680_v0, %v1674_v62 }
 0x185   : > { %v1662_v6 = vadd.f32 %v1661_v4, %v1660_v63  ;;  %v1682_v9 = vrot.slane %v1681_v53, 4 }
 0x187   : > { %v1663_v2 = vrot.slane %v1662_v6, 2  ;;  %v1683_v55 = vadd.f32 %v1682_v9, %v1681_v53 }
 0x189   : > { %v1664_v12 = vadd.f32 %v1663_v2, %v1662_v6  ;;  %v1684_v16 = vrot.slane %v1683_v55, 2 }
 0x18b   : > { %v1665_v7 = vrot.slane %v1664_v12, 1  ;;  %v1685_v29 = vadd.f32 %v1684_v16, %v1683_v55 }
 0x18d   : > { %v1686_v5 = vrot.slane %v1685_v29, 1  ;;  %v1666_v17 = vadd.f32 %v1665_v7, %v1664_v12 }
 0x18f   : > { %v1687_v56 = vadd.f32 %v1686_v5, %v1685_v29 }
 0x191   : > { %v1689_v58 = vsel %vm1688_vm0, %v1666_v17, %v1687_v56 }
 0x192   : > { %1690 = vst [vmem:[%s235_s24] sm:$0x3] %v1689_v58 }
 0x193 PF: > { %s16_s18 = sadd.s32 1, %s2420_s18  }
 0x194   : > { %p13_p4 = scmp.ge.s32.totalorder %s16_s18, 4  }
 0x196   :  { %15 = sbr.rel (!%p13_p4) target bundleno = 1 (0x1), region = 88 }

</bundles_post_ra>
